<compile_context>
chip_gen: v6e
topology: v6e:2x2x1
jax: 0.10.0
libtpu: 0.0.40
codegen_flags: <defaults>
</compile_context>

<pallas_src>
import functools
import math

import jax
import jax.numpy as jnp
from jax.experimental import pallas as pl
from jax.experimental.pallas import tpu as pltpu

# ----------------------------- model config ---------------------------------
VOCAB = 100
D = 32            # bert hidden size (spec: 768, scaled down)
N_HEADS = 2
HEAD_DIM = D // N_HEADS
FFN = 64          # intermediate size
N_LAYERS = 2
MAX_POS = 64
CLF_HIDDEN = 50   # H in the torch module (D_in, H, D_out) = (768, 50, 2)
NUM_LABELS = 2    # D_out
LN_EPS = 1e-12

_VMEM = pl.BlockSpec(memory_space=pltpu.MemorySpace.VMEM)
_SMEM = pl.BlockSpec(memory_space=pltpu.MemorySpace.SMEM)


# ----------------------------- fused kernel ----------------------------------
def _fused_forward_kernel(
    # activations / per-example inputs
    emb_ref, mask_ref, labels_ref,
    # embedding LayerNorm
    eln_g_ref, eln_b_ref,
    # stacked encoder-layer weights  (leading dim = layer)
    wqkv_ref, bqkv_ref, wo_ref, bo_ref,
    ln1g_ref, ln1b_ref,
    w1_ref, b1_ref, w2_ref, b2_ref,
    ln2g_ref, ln2b_ref,
    # classifier head
    cw1_ref, cb1_ref, cw2_ref, cb2_ref,
    # outputs
    logits_ref, loss_ref,
    *, batch, seq,
):
    scale = 1.0 / math.sqrt(HEAD_DIM)

    def layernorm(x, g, b):
        mu = jnp.mean(x, axis=-1, keepdims=True)
        var = jnp.mean(jnp.square(x - mu), axis=-1, keepdims=True)
        return (x - mu) * jax.lax.rsqrt(var + LN_EPS) * g + b

    def matmul(x, w_bf16):
        # bf16 MXU operands, f32 accumulation.
        return jnp.dot(x.astype(jnp.bfloat16), w_bf16,
                       preferred_element_type=jnp.float32)

    # ---- embedding LayerNorm (no dummy zero residual) ----
    x = layernorm(emb_ref[...], eln_g_ref[...], eln_b_ref[...])   # [B*S, D] f32

    mask_bias = mask_ref[...]                                     # [B, S] additive

    # ---- encoder layers (statically unrolled, weights indexed by layer) ----
    for l in range(N_LAYERS):
        # fused QKV projection: one [D, 3D] matmul instead of three [D, D].
        qkv = matmul(x, wqkv_ref[l]) + bqkv_ref[l]                # [B*S, 3D] f32
        q = qkv[:, 0 * D:1 * D]
        k = qkv[:, 1 * D:2 * D]
        v = qkv[:, 2 * D:3 * D]

        # in-kernel head split: per (batch, head) 2D MXU dots, no transposes.
        ctx_rows = []
        for bi in range(batch):
            rows = slice(bi * seq, (bi + 1) * seq)
            bias = mask_bias[bi:bi + 1, :]                        # [1, S]
            head_outs = []
            for hi in range(N_HEADS):
                cols = slice(hi * HEAD_DIM, (hi + 1) * HEAD_DIM)
                qh = q[rows, cols].astype(jnp.bfloat16)           # [S, hd]
                kh = k[rows, cols].astype(jnp.bfloat16)           # [S, hd]
                vh = v[rows, cols].astype(jnp.bfloat16)           # [S, hd]
                s = jax.lax.dot_general(                          # q @ k^T
                    qh, kh, (((1,), (1,)), ((), ())),
                    preferred_element_type=jnp.float32) * scale + bias
                m = jnp.max(s, axis=-1, keepdims=True)
                p = jnp.exp(s - m)
                p = p / jnp.sum(p, axis=-1, keepdims=True)
                head_outs.append(
                    jnp.dot(p.astype(jnp.bfloat16), vh,
                            preferred_element_type=jnp.float32))  # [S, hd]
            ctx_rows.append(jnp.concatenate(head_outs, axis=-1))  # [S, D]
        ctx = jnp.concatenate(ctx_rows, axis=0)                   # [B*S, D]

        attn_out = matmul(ctx, wo_ref[l]) + bo_ref[l]
        x = layernorm(x + attn_out, ln1g_ref[l], ln1b_ref[l])

        h = matmul(x, w1_ref[l]) + b1_ref[l]
        # TODO(synk): HF BERT default is exact erf GELU; tanh approximation used.
        c = math.sqrt(2.0 / math.pi)
        h = 0.5 * h * (1.0 + jnp.tanh(c * (h + 0.044715 * h * h * h)))
        ffn_out = matmul(h, w2_ref[l]) + b2_ref[l]
        x = layernorm(x + ffn_out, ln2g_ref[l], ln2b_ref[l])

    # ---- CLS pooling: hidden state of token 0 of each sequence ----
    cls = jnp.concatenate(
        [x[bi * seq:bi * seq + 1, :] for bi in range(batch)], axis=0)  # [B, D]

    # ---- classifier head: Linear -> ReLU -> Linear ----
    hcls = jnp.maximum(matmul(cls, cw1_ref[...]) + cb1_ref[...], 0.0)  # [B, H]
    logits = matmul(hcls, cw2_ref[...]) + cb2_ref[...]                 # [B, C] f32
    logits_ref[...] = logits

    # ---- cross-entropy (mean over batch), scalar loss to SMEM ----
    labels = labels_ref[...]                                           # [B, 1] i32
    mx = jnp.max(logits, axis=-1, keepdims=True)
    lse = mx + jnp.log(jnp.sum(jnp.exp(logits - mx), axis=-1, keepdims=True))
    iota = jax.lax.broadcasted_iota(jnp.int32, logits.shape, 1)
    correct = jnp.sum(jnp.where(iota == labels, logits, 0.0),
                      axis=-1, keepdims=True)
    loss_ref[0, 0] = jnp.mean(lse - correct)


# ----------------------------- parameter init --------------------------------
def _init(key, shape, scale=0.02):
    return (scale * jax.random.normal(key, shape)).astype(jnp.float32)


def init_params(key):
    keys = iter(jax.random.split(key, 64))

    wqkv, bqkv, wo, bo = [], [], [], []
    ln1g, ln1b, w1, b1, w2, b2, ln2g, ln2b = [], [], [], [], [], [], [], []
    for _ in range(N_LAYERS):
        wq = _init(next(keys), (D, D))
        wk = _init(next(keys), (D, D))
        wv = _init(next(keys), (D, D))
        wqkv.append(jnp.concatenate([wq, wk, wv], axis=-1))       # [D, 3D]
        bqkv.append(jnp.zeros((1, 3 * D), jnp.float32))
        wo.append(_init(next(keys), (D, D)))
        bo.append(jnp.zeros((1, D), jnp.float32))
        ln1g.append(jnp.ones((1, D), jnp.float32))
        ln1b.append(jnp.zeros((1, D), jnp.float32))
        w1.append(_init(next(keys), (D, FFN)))
        b1.append(jnp.zeros((1, FFN), jnp.float32))
        w2.append(_init(next(keys), (FFN, D)))
        b2.append(jnp.zeros((1, D), jnp.float32))
        ln2g.append(jnp.ones((1, D), jnp.float32))
        ln2b.append(jnp.zeros((1, D), jnp.float32))

    return {
        # embeddings (gathered in plain JAX)
        "word_emb": _init(next(keys), (VOCAB, D)),
        "pos_emb": _init(next(keys), (MAX_POS, D)),
        "type_emb": _init(next(keys), (2, D)),
        "emb_ln_g": jnp.ones((1, D), jnp.float32),
        "emb_ln_b": jnp.zeros((1, D), jnp.float32),
        # stacked encoder weights; matmul weights pre-cast to bf16
        "wqkv": jnp.stack(wqkv).astype(jnp.bfloat16),   # [L, D, 3D]
        "bqkv": jnp.stack(bqkv),
        "wo": jnp.stack(wo).astype(jnp.bfloat16),       # [L, D, D]
        "bo": jnp.stack(bo),
        "ln1_g": jnp.stack(ln1g), "ln1_b": jnp.stack(ln1b),
        "w1": jnp.stack(w1).astype(jnp.bfloat16),       # [L, D, FFN]
        "b1": jnp.stack(b1),
        "w2": jnp.stack(w2).astype(jnp.bfloat16),       # [L, FFN, D]
        "b2": jnp.stack(b2),
        "ln2_g": jnp.stack(ln2g), "ln2_b": jnp.stack(ln2b),
        # classifier head
        "clf_w1": _init(next(keys), (D, CLF_HIDDEN)).astype(jnp.bfloat16),
        "clf_b1": jnp.zeros((1, CLF_HIDDEN), jnp.float32),
        "clf_w2": _init(next(keys), (CLF_HIDDEN, NUM_LABELS)).astype(jnp.bfloat16),
        "clf_b2": jnp.zeros((1, NUM_LABELS), jnp.float32),
    }


# ----------------------------- forward (glue) --------------------------------
def bert_seq_classifier_forward(params, input_ids, labels, attention_mask):
    b, s = input_ids.shape

    # Embedding table gathers stay in plain JAX (data-dependent gather);
    # everything downstream runs inside one fused Pallas kernel.
    we = params["word_emb"][input_ids]                  # [B, S, D]
    pe = params["pos_emb"][:s][None, :, :]
    te = params["type_emb"][0][None, None, :]           # token_type_ids == 0
    emb_sum = (we + pe + te).reshape(b * s, D).astype(jnp.float32)

    mask_bias = (1.0 - attention_mask.astype(jnp.float32)) * -1e9   # [B, S]
    labels_2d = labels.reshape(b, 1).astype(jnp.int32)

    kernel = functools.partial(_fused_forward_kernel, batch=b, seq=s)
    logits, loss = pl.pallas_call(
        kernel,
        out_shape=(
            jax.ShapeDtypeStruct((b, NUM_LABELS), jnp.float32),
            jax.ShapeDtypeStruct((1, 1), jnp.float32),
        ),
        in_specs=[_VMEM] * 21,
        out_specs=(_VMEM, _SMEM),
    )(
        emb_sum, mask_bias, labels_2d,
        params["emb_ln_g"], params["emb_ln_b"],
        params["wqkv"], params["bqkv"], params["wo"], params["bo"],
        params["ln1_g"], params["ln1_b"],
        params["w1"], params["b1"], params["w2"], params["b2"],
        params["ln2_g"], params["ln2_b"],
        params["clf_w1"], params["clf_b1"], params["clf_w2"], params["clf_b2"],
    )
    return loss[0, 0], logits


# ----------------------------------- main ------------------------------------
if __name__ == "__main__":
    B, S = 2, 8
    key = jax.random.PRNGKey(0)
    k_param, k_ids, k_lab = jax.random.split(key, 3)

    params = init_params(k_param)
    input_ids = jax.random.randint(k_ids, (B, S), 0, VOCAB, dtype=jnp.int32)
    labels = jax.random.randint(k_lab, (B,), 0, NUM_LABELS, dtype=jnp.int32)
    # padding mask: last two tokens of the second sequence are padding
    attention_mask = jnp.ones((B, S), jnp.int32).at[1, S - 2:].set(0)

    loss, logits = jax.jit(bert_seq_classifier_forward)(
        params, input_ids, labels, attention_mask)
    jax.block_until_ready((loss, logits))
    assert logits.shape == (B, NUM_LABELS)
    assert jnp.isfinite(loss)
    print("KERNEL_OK")
</pallas_src>

<mosaic_0001>
module attributes {stable_mosaic.version = 11 : i64} {
  func.func @_fused_forward_kernel(%arg0: memref<16x32xf32, #tpu.memory_space<vmem>>, %arg1: memref<2x8xf32, #tpu.memory_space<vmem>>, %arg2: memref<2x1xi32, #tpu.memory_space<vmem>>, %arg3: memref<1x32xf32, #tpu.memory_space<vmem>>, %arg4: memref<1x32xf32, #tpu.memory_space<vmem>>, %arg5: memref<2x32x96xbf16, #tpu.memory_space<vmem>>, %arg6: memref<2x1x96xf32, #tpu.memory_space<vmem>>, %arg7: memref<2x32x32xbf16, #tpu.memory_space<vmem>>, %arg8: memref<2x1x32xf32, #tpu.memory_space<vmem>>, %arg9: memref<2x1x32xf32, #tpu.memory_space<vmem>>, %arg10: memref<2x1x32xf32, #tpu.memory_space<vmem>>, %arg11: memref<2x32x64xbf16, #tpu.memory_space<vmem>>, %arg12: memref<2x1x64xf32, #tpu.memory_space<vmem>>, %arg13: memref<2x64x32xbf16, #tpu.memory_space<vmem>>, %arg14: memref<2x1x32xf32, #tpu.memory_space<vmem>>, %arg15: memref<2x1x32xf32, #tpu.memory_space<vmem>>, %arg16: memref<2x1x32xf32, #tpu.memory_space<vmem>>, %arg17: memref<32x50xbf16, #tpu.memory_space<vmem>>, %arg18: memref<1x50xf32, #tpu.memory_space<vmem>>, %arg19: memref<50x2xbf16, #tpu.memory_space<vmem>>, %arg20: memref<1x2xf32, #tpu.memory_space<vmem>>, %arg21: memref<2x2xf32, #tpu.memory_space<vmem>>, %arg22: memref<1x1xf32, #tpu.memory_space<smem>>) attributes {dimension_semantics = [], scalar_prefetch = 0 : i64, scratch_operands = 0 : i64, tpu.core_type = #tpu.core_type<tc>} {
    %c0 = arith.constant 0 : index
    %c0_0 = arith.constant 0 : index
    %0 = vector.load %arg0[%c0, %c0_0] : memref<16x32xf32, #tpu.memory_space<vmem>>, vector<16x32xf32>
    %c0_1 = arith.constant 0 : index
    %c0_2 = arith.constant 0 : index
    %1 = vector.load %arg3[%c0_1, %c0_2] : memref<1x32xf32, #tpu.memory_space<vmem>>, vector<1x32xf32>
    %c0_3 = arith.constant 0 : index
    %c0_4 = arith.constant 0 : index
    %2 = vector.load %arg4[%c0_3, %c0_4] : memref<1x32xf32, #tpu.memory_space<vmem>>, vector<1x32xf32>
    %cst = arith.constant dense<0.000000e+00> : vector<16xf32>
    %3 = vector.multi_reduction <add>, %0, %cst [1] : vector<16x32xf32> to vector<16xf32>
    %4 = vector.shape_cast %3 : vector<16xf32> to vector<16x1xf32>
    %cst_5 = arith.constant 3.200000e+01 : f32
    %5 = vector.broadcast %cst_5 : f32 to vector<16x1xf32>
    %6 = arith.divf %4, %5 : vector<16x1xf32>
    %7 = vector.broadcast %6 : vector<16x1xf32> to vector<16x32xf32>
    %8 = arith.subf %0, %7 : vector<16x32xf32>
    %9 = arith.mulf %8, %8 : vector<16x32xf32>
    %cst_6 = arith.constant dense<0.000000e+00> : vector<16xf32>
    %10 = vector.multi_reduction <add>, %9, %cst_6 [1] : vector<16x32xf32> to vector<16xf32>
    %11 = vector.shape_cast %10 : vector<16xf32> to vector<16x1xf32>
    %cst_7 = arith.constant 3.200000e+01 : f32
    %12 = vector.broadcast %cst_7 : f32 to vector<16x1xf32>
    %13 = arith.divf %11, %12 : vector<16x1xf32>
    %14 = vector.broadcast %6 : vector<16x1xf32> to vector<16x32xf32>
    %15 = arith.subf %0, %14 : vector<16x32xf32>
    %cst_8 = arith.constant 9.99999996E-13 : f32
    %16 = vector.broadcast %cst_8 : f32 to vector<16x1xf32>
    %17 = arith.addf %13, %16 : vector<16x1xf32>
    %18 = math.rsqrt %17 : vector<16x1xf32>
    %19 = vector.broadcast %18 : vector<16x1xf32> to vector<16x32xf32>
    %20 = arith.mulf %15, %19 : vector<16x32xf32>
    %21 = vector.broadcast %1 : vector<1x32xf32> to vector<16x32xf32>
    %22 = arith.mulf %20, %21 : vector<16x32xf32>
    %23 = vector.broadcast %2 : vector<1x32xf32> to vector<16x32xf32>
    %24 = arith.addf %22, %23 : vector<16x32xf32>
    %c0_9 = arith.constant 0 : index
    %c0_10 = arith.constant 0 : index
    %25 = vector.load %arg1[%c0_9, %c0_10] : memref<2x8xf32, #tpu.memory_space<vmem>>, vector<2x8xf32>
    %c0_11 = arith.constant 0 : index
    %c0_12 = arith.constant 0 : index
    %c0_13 = arith.constant 0 : index
    %26 = vector.load %arg5[%c0_11, %c0_12, %c0_13] : memref<2x32x96xbf16, #tpu.memory_space<vmem>>, vector<1x32x96xbf16>
    %27 = vector.shape_cast %26 : vector<1x32x96xbf16> to vector<32x96xbf16>
    %28 = arith.truncf %24 : vector<16x32xf32> to vector<16x32xbf16>
    %cst_14 = arith.constant dense<0.000000e+00> : vector<16x96xf32>
    %29 = tpu.matmul %28, %27, %cst_14 {dimension_numbers = #tpu.dot_dimension_numbers<[1], [0], [0], [1], [0, 0, 1, 1], [], []>} : vector<16x32xbf16>, vector<32x96xbf16>, vector<16x96xf32> -> vector<16x96xf32>
    %c0_15 = arith.constant 0 : index
    %c0_16 = arith.constant 0 : index
    %c0_17 = arith.constant 0 : index
    %30 = vector.load %arg6[%c0_15, %c0_16, %c0_17] : memref<2x1x96xf32, #tpu.memory_space<vmem>>, vector<1x1x96xf32>
    %31 = vector.shape_cast %30 : vector<1x1x96xf32> to vector<1x96xf32>
    %32 = vector.broadcast %31 : vector<1x96xf32> to vector<16x96xf32>
    %33 = arith.addf %29, %32 : vector<16x96xf32>
    %34 = vector.extract_strided_slice %33 {offsets = [0, 0], sizes = [16, 32], strides = [1, 1]} : vector<16x96xf32> to vector<16x32xf32>
    %35 = vector.extract_strided_slice %33 {offsets = [0, 32], sizes = [16, 32], strides = [1, 1]} : vector<16x96xf32> to vector<16x32xf32>
    %36 = vector.extract_strided_slice %33 {offsets = [0, 64], sizes = [16, 32], strides = [1, 1]} : vector<16x96xf32> to vector<16x32xf32>
    %37 = vector.extract_strided_slice %25 {offsets = [0, 0], sizes = [1, 8], strides = [1, 1]} : vector<2x8xf32> to vector<1x8xf32>
    %38 = vector.extract_strided_slice %34 {offsets = [0, 0], sizes = [8, 16], strides = [1, 1]} : vector<16x32xf32> to vector<8x16xf32>
    %39 = arith.truncf %38 : vector<8x16xf32> to vector<8x16xbf16>
    %40 = vector.extract_strided_slice %35 {offsets = [0, 0], sizes = [8, 16], strides = [1, 1]} : vector<16x32xf32> to vector<8x16xf32>
    %41 = arith.truncf %40 : vector<8x16xf32> to vector<8x16xbf16>
    %42 = vector.extract_strided_slice %36 {offsets = [0, 0], sizes = [8, 16], strides = [1, 1]} : vector<16x32xf32> to vector<8x16xf32>
    %43 = arith.truncf %42 : vector<8x16xf32> to vector<8x16xbf16>
    %cst_18 = arith.constant dense<0.000000e+00> : vector<8x8xf32>
    %44 = tpu.matmul %39, %41, %cst_18 {dimension_numbers = #tpu.dot_dimension_numbers<[1], [1], [0], [0], [0, 0, 1, 0], [], []>} : vector<8x16xbf16>, vector<8x16xbf16>, vector<8x8xf32> -> vector<8x8xf32>
    %cst_19 = arith.constant 2.500000e-01 : f32
    %45 = vector.broadcast %cst_19 : f32 to vector<8x8xf32>
    %46 = arith.mulf %44, %45 : vector<8x8xf32>
    %47 = vector.broadcast %37 : vector<1x8xf32> to vector<8x8xf32>
    %48 = arith.addf %46, %47 : vector<8x8xf32>
    %cst_20 = arith.constant dense<0xFF800000> : vector<8xf32>
    %49 = vector.multi_reduction <maximumf>, %48, %cst_20 [1] : vector<8x8xf32> to vector<8xf32>
    %50 = vector.shape_cast %49 : vector<8xf32> to vector<8x1xf32>
    %51 = vector.broadcast %50 : vector<8x1xf32> to vector<8x8xf32>
    %52 = arith.subf %48, %51 : vector<8x8xf32>
    %53 = math.exp %52 : vector<8x8xf32>
    %cst_21 = arith.constant dense<0.000000e+00> : vector<8xf32>
    %54 = vector.multi_reduction <add>, %53, %cst_21 [1] : vector<8x8xf32> to vector<8xf32>
    %55 = vector.shape_cast %54 : vector<8xf32> to vector<8x1xf32>
    %56 = vector.broadcast %55 : vector<8x1xf32> to vector<8x8xf32>
    %57 = arith.divf %53, %56 : vector<8x8xf32>
    %58 = arith.truncf %57 : vector<8x8xf32> to vector<8x8xbf16>
    %cst_22 = arith.constant dense<0.000000e+00> : vector<8x16xf32>
    %59 = tpu.matmul %58, %43, %cst_22 {dimension_numbers = #tpu.dot_dimension_numbers<[1], [0], [0], [1], [0, 0, 1, 1], [], []>} : vector<8x8xbf16>, vector<8x16xbf16>, vector<8x16xf32> -> vector<8x16xf32>
    %60 = vector.extract_strided_slice %34 {offsets = [0, 16], sizes = [8, 16], strides = [1, 1]} : vector<16x32xf32> to vector<8x16xf32>
    %61 = arith.truncf %60 : vector<8x16xf32> to vector<8x16xbf16>
    %62 = vector.extract_strided_slice %35 {offsets = [0, 16], sizes = [8, 16], strides = [1, 1]} : vector<16x32xf32> to vector<8x16xf32>
    %63 = arith.truncf %62 : vector<8x16xf32> to vector<8x16xbf16>
    %64 = vector.extract_strided_slice %36 {offsets = [0, 16], sizes = [8, 16], strides = [1, 1]} : vector<16x32xf32> to vector<8x16xf32>
    %65 = arith.truncf %64 : vector<8x16xf32> to vector<8x16xbf16>
    %cst_23 = arith.constant dense<0.000000e+00> : vector<8x8xf32>
    %66 = tpu.matmul %61, %63, %cst_23 {dimension_numbers = #tpu.dot_dimension_numbers<[1], [1], [0], [0], [0, 0, 1, 0], [], []>} : vector<8x16xbf16>, vector<8x16xbf16>, vector<8x8xf32> -> vector<8x8xf32>
    %cst_24 = arith.constant 2.500000e-01 : f32
    %67 = vector.broadcast %cst_24 : f32 to vector<8x8xf32>
    %68 = arith.mulf %66, %67 : vector<8x8xf32>
    %69 = vector.broadcast %37 : vector<1x8xf32> to vector<8x8xf32>
    %70 = arith.addf %68, %69 : vector<8x8xf32>
    %cst_25 = arith.constant dense<0xFF800000> : vector<8xf32>
    %71 = vector.multi_reduction <maximumf>, %70, %cst_25 [1] : vector<8x8xf32> to vector<8xf32>
    %72 = vector.shape_cast %71 : vector<8xf32> to vector<8x1xf32>
    %73 = vector.broadcast %72 : vector<8x1xf32> to vector<8x8xf32>
    %74 = arith.subf %70, %73 : vector<8x8xf32>
    %75 = math.exp %74 : vector<8x8xf32>
    %cst_26 = arith.constant dense<0.000000e+00> : vector<8xf32>
    %76 = vector.multi_reduction <add>, %75, %cst_26 [1] : vector<8x8xf32> to vector<8xf32>
    %77 = vector.shape_cast %76 : vector<8xf32> to vector<8x1xf32>
    %78 = vector.broadcast %77 : vector<8x1xf32> to vector<8x8xf32>
    %79 = arith.divf %75, %78 : vector<8x8xf32>
    %80 = arith.truncf %79 : vector<8x8xf32> to vector<8x8xbf16>
    %cst_27 = arith.constant dense<0.000000e+00> : vector<8x16xf32>
    %81 = tpu.matmul %80, %65, %cst_27 {dimension_numbers = #tpu.dot_dimension_numbers<[1], [0], [0], [1], [0, 0, 1, 1], [], []>} : vector<8x8xbf16>, vector<8x16xbf16>, vector<8x16xf32> -> vector<8x16xf32>
    %82 = tpu.concatenate %59, %81 in 1 : vector<8x16xf32>, vector<8x16xf32> -> vector<8x32xf32>
    %83 = vector.extract_strided_slice %25 {offsets = [1, 0], sizes = [1, 8], strides = [1, 1]} : vector<2x8xf32> to vector<1x8xf32>
    %84 = vector.extract_strided_slice %34 {offsets = [8, 0], sizes = [8, 16], strides = [1, 1]} : vector<16x32xf32> to vector<8x16xf32>
    %85 = arith.truncf %84 : vector<8x16xf32> to vector<8x16xbf16>
    %86 = vector.extract_strided_slice %35 {offsets = [8, 0], sizes = [8, 16], strides = [1, 1]} : vector<16x32xf32> to vector<8x16xf32>
    %87 = arith.truncf %86 : vector<8x16xf32> to vector<8x16xbf16>
    %88 = vector.extract_strided_slice %36 {offsets = [8, 0], sizes = [8, 16], strides = [1, 1]} : vector<16x32xf32> to vector<8x16xf32>
    %89 = arith.truncf %88 : vector<8x16xf32> to vector<8x16xbf16>
    %cst_28 = arith.constant dense<0.000000e+00> : vector<8x8xf32>
    %90 = tpu.matmul %85, %87, %cst_28 {dimension_numbers = #tpu.dot_dimension_numbers<[1], [1], [0], [0], [0, 0, 1, 0], [], []>} : vector<8x16xbf16>, vector<8x16xbf16>, vector<8x8xf32> -> vector<8x8xf32>
    %cst_29 = arith.constant 2.500000e-01 : f32
    %91 = vector.broadcast %cst_29 : f32 to vector<8x8xf32>
    %92 = arith.mulf %90, %91 : vector<8x8xf32>
    %93 = vector.broadcast %83 : vector<1x8xf32> to vector<8x8xf32>
    %94 = arith.addf %92, %93 : vector<8x8xf32>
    %cst_30 = arith.constant dense<0xFF800000> : vector<8xf32>
    %95 = vector.multi_reduction <maximumf>, %94, %cst_30 [1] : vector<8x8xf32> to vector<8xf32>
    %96 = vector.shape_cast %95 : vector<8xf32> to vector<8x1xf32>
    %97 = vector.broadcast %96 : vector<8x1xf32> to vector<8x8xf32>
    %98 = arith.subf %94, %97 : vector<8x8xf32>
    %99 = math.exp %98 : vector<8x8xf32>
    %cst_31 = arith.constant dense<0.000000e+00> : vector<8xf32>
    %100 = vector.multi_reduction <add>, %99, %cst_31 [1] : vector<8x8xf32> to vector<8xf32>
    %101 = vector.shape_cast %100 : vector<8xf32> to vector<8x1xf32>
    %102 = vector.broadcast %101 : vector<8x1xf32> to vector<8x8xf32>
    %103 = arith.divf %99, %102 : vector<8x8xf32>
    %104 = arith.truncf %103 : vector<8x8xf32> to vector<8x8xbf16>
    %cst_32 = arith.constant dense<0.000000e+00> : vector<8x16xf32>
    %105 = tpu.matmul %104, %89, %cst_32 {dimension_numbers = #tpu.dot_dimension_numbers<[1], [0], [0], [1], [0, 0, 1, 1], [], []>} : vector<8x8xbf16>, vector<8x16xbf16>, vector<8x16xf32> -> vector<8x16xf32>
    %106 = vector.extract_strided_slice %34 {offsets = [8, 16], sizes = [8, 16], strides = [1, 1]} : vector<16x32xf32> to vector<8x16xf32>
    %107 = arith.truncf %106 : vector<8x16xf32> to vector<8x16xbf16>
    %108 = vector.extract_strided_slice %35 {offsets = [8, 16], sizes = [8, 16], strides = [1, 1]} : vector<16x32xf32> to vector<8x16xf32>
    %109 = arith.truncf %108 : vector<8x16xf32> to vector<8x16xbf16>
    %110 = vector.extract_strided_slice %36 {offsets = [8, 16], sizes = [8, 16], strides = [1, 1]} : vector<16x32xf32> to vector<8x16xf32>
    %111 = arith.truncf %110 : vector<8x16xf32> to vector<8x16xbf16>
    %cst_33 = arith.constant dense<0.000000e+00> : vector<8x8xf32>
    %112 = tpu.matmul %107, %109, %cst_33 {dimension_numbers = #tpu.dot_dimension_numbers<[1], [1], [0], [0], [0, 0, 1, 0], [], []>} : vector<8x16xbf16>, vector<8x16xbf16>, vector<8x8xf32> -> vector<8x8xf32>
    %cst_34 = arith.constant 2.500000e-01 : f32
    %113 = vector.broadcast %cst_34 : f32 to vector<8x8xf32>
    %114 = arith.mulf %112, %113 : vector<8x8xf32>
    %115 = vector.broadcast %83 : vector<1x8xf32> to vector<8x8xf32>
    %116 = arith.addf %114, %115 : vector<8x8xf32>
    %cst_35 = arith.constant dense<0xFF800000> : vector<8xf32>
    %117 = vector.multi_reduction <maximumf>, %116, %cst_35 [1] : vector<8x8xf32> to vector<8xf32>
    %118 = vector.shape_cast %117 : vector<8xf32> to vector<8x1xf32>
    %119 = vector.broadcast %118 : vector<8x1xf32> to vector<8x8xf32>
    %120 = arith.subf %116, %119 : vector<8x8xf32>
    %121 = math.exp %120 : vector<8x8xf32>
    %cst_36 = arith.constant dense<0.000000e+00> : vector<8xf32>
    %122 = vector.multi_reduction <add>, %121, %cst_36 [1] : vector<8x8xf32> to vector<8xf32>
    %123 = vector.shape_cast %122 : vector<8xf32> to vector<8x1xf32>
    %124 = vector.broadcast %123 : vector<8x1xf32> to vector<8x8xf32>
    %125 = arith.divf %121, %124 : vector<8x8xf32>
    %126 = arith.truncf %125 : vector<8x8xf32> to vector<8x8xbf16>
    %cst_37 = arith.constant dense<0.000000e+00> : vector<8x16xf32>
    %127 = tpu.matmul %126, %111, %cst_37 {dimension_numbers = #tpu.dot_dimension_numbers<[1], [0], [0], [1], [0, 0, 1, 1], [], []>} : vector<8x8xbf16>, vector<8x16xbf16>, vector<8x16xf32> -> vector<8x16xf32>
    %128 = tpu.concatenate %105, %127 in 1 : vector<8x16xf32>, vector<8x16xf32> -> vector<8x32xf32>
    %129 = tpu.concatenate %82, %128 in 0 : vector<8x32xf32>, vector<8x32xf32> -> vector<16x32xf32>
    %c0_38 = arith.constant 0 : index
    %c0_39 = arith.constant 0 : index
    %c0_40 = arith.constant 0 : index
    %130 = vector.load %arg7[%c0_38, %c0_39, %c0_40] : memref<2x32x32xbf16, #tpu.memory_space<vmem>>, vector<1x32x32xbf16>
    %131 = vector.shape_cast %130 : vector<1x32x32xbf16> to vector<32x32xbf16>
    %132 = arith.truncf %129 : vector<16x32xf32> to vector<16x32xbf16>
    %cst_41 = arith.constant dense<0.000000e+00> : vector<16x32xf32>
    %133 = tpu.matmul %132, %131, %cst_41 {dimension_numbers = #tpu.dot_dimension_numbers<[1], [0], [0], [1], [0, 0, 1, 1], [], []>} : vector<16x32xbf16>, vector<32x32xbf16>, vector<16x32xf32> -> vector<16x32xf32>
    %c0_42 = arith.constant 0 : index
    %c0_43 = arith.constant 0 : index
    %c0_44 = arith.constant 0 : index
    %134 = vector.load %arg8[%c0_42, %c0_43, %c0_44] : memref<2x1x32xf32, #tpu.memory_space<vmem>>, vector<1x1x32xf32>
    %135 = vector.shape_cast %134 : vector<1x1x32xf32> to vector<1x32xf32>
    %136 = vector.broadcast %135 : vector<1x32xf32> to vector<16x32xf32>
    %137 = arith.addf %133, %136 : vector<16x32xf32>
    %138 = arith.addf %24, %137 : vector<16x32xf32>
    %c0_45 = arith.constant 0 : index
    %c0_46 = arith.constant 0 : index
    %c0_47 = arith.constant 0 : index
    %139 = vector.load %arg9[%c0_45, %c0_46, %c0_47] : memref<2x1x32xf32, #tpu.memory_space<vmem>>, vector<1x1x32xf32>
    %140 = vector.shape_cast %139 : vector<1x1x32xf32> to vector<1x32xf32>
    %c0_48 = arith.constant 0 : index
    %c0_49 = arith.constant 0 : index
    %c0_50 = arith.constant 0 : index
    %141 = vector.load %arg10[%c0_48, %c0_49, %c0_50] : memref<2x1x32xf32, #tpu.memory_space<vmem>>, vector<1x1x32xf32>
    %142 = vector.shape_cast %141 : vector<1x1x32xf32> to vector<1x32xf32>
    %cst_51 = arith.constant dense<0.000000e+00> : vector<16xf32>
    %143 = vector.multi_reduction <add>, %138, %cst_51 [1] : vector<16x32xf32> to vector<16xf32>
    %144 = vector.shape_cast %143 : vector<16xf32> to vector<16x1xf32>
    %cst_52 = arith.constant 3.200000e+01 : f32
    %145 = vector.broadcast %cst_52 : f32 to vector<16x1xf32>
    %146 = arith.divf %144, %145 : vector<16x1xf32>
    %147 = vector.broadcast %146 : vector<16x1xf32> to vector<16x32xf32>
    %148 = arith.subf %138, %147 : vector<16x32xf32>
    %149 = arith.mulf %148, %148 : vector<16x32xf32>
    %cst_53 = arith.constant dense<0.000000e+00> : vector<16xf32>
    %150 = vector.multi_reduction <add>, %149, %cst_53 [1] : vector<16x32xf32> to vector<16xf32>
    %151 = vector.shape_cast %150 : vector<16xf32> to vector<16x1xf32>
    %cst_54 = arith.constant 3.200000e+01 : f32
    %152 = vector.broadcast %cst_54 : f32 to vector<16x1xf32>
    %153 = arith.divf %151, %152 : vector<16x1xf32>
    %154 = vector.broadcast %146 : vector<16x1xf32> to vector<16x32xf32>
    %155 = arith.subf %138, %154 : vector<16x32xf32>
    %cst_55 = arith.constant 9.99999996E-13 : f32
    %156 = vector.broadcast %cst_55 : f32 to vector<16x1xf32>
    %157 = arith.addf %153, %156 : vector<16x1xf32>
    %158 = math.rsqrt %157 : vector<16x1xf32>
    %159 = vector.broadcast %158 : vector<16x1xf32> to vector<16x32xf32>
    %160 = arith.mulf %155, %159 : vector<16x32xf32>
    %161 = vector.broadcast %140 : vector<1x32xf32> to vector<16x32xf32>
    %162 = arith.mulf %160, %161 : vector<16x32xf32>
    %163 = vector.broadcast %142 : vector<1x32xf32> to vector<16x32xf32>
    %164 = arith.addf %162, %163 : vector<16x32xf32>
    %c0_56 = arith.constant 0 : index
    %c0_57 = arith.constant 0 : index
    %c0_58 = arith.constant 0 : index
    %165 = vector.load %arg11[%c0_56, %c0_57, %c0_58] : memref<2x32x64xbf16, #tpu.memory_space<vmem>>, vector<1x32x64xbf16>
    %166 = vector.shape_cast %165 : vector<1x32x64xbf16> to vector<32x64xbf16>
    %167 = arith.truncf %164 : vector<16x32xf32> to vector<16x32xbf16>
    %cst_59 = arith.constant dense<0.000000e+00> : vector<16x64xf32>
    %168 = tpu.matmul %167, %166, %cst_59 {dimension_numbers = #tpu.dot_dimension_numbers<[1], [0], [0], [1], [0, 0, 1, 1], [], []>} : vector<16x32xbf16>, vector<32x64xbf16>, vector<16x64xf32> -> vector<16x64xf32>
    %c0_60 = arith.constant 0 : index
    %c0_61 = arith.constant 0 : index
    %c0_62 = arith.constant 0 : index
    %169 = vector.load %arg12[%c0_60, %c0_61, %c0_62] : memref<2x1x64xf32, #tpu.memory_space<vmem>>, vector<1x1x64xf32>
    %170 = vector.shape_cast %169 : vector<1x1x64xf32> to vector<1x64xf32>
    %171 = vector.broadcast %170 : vector<1x64xf32> to vector<16x64xf32>
    %172 = arith.addf %168, %171 : vector<16x64xf32>
    %cst_63 = arith.constant 5.000000e-01 : f32
    %173 = vector.broadcast %cst_63 : f32 to vector<16x64xf32>
    %174 = arith.mulf %173, %172 : vector<16x64xf32>
    %cst_64 = arith.constant 4.471500e-02 : f32
    %175 = vector.broadcast %cst_64 : f32 to vector<16x64xf32>
    %176 = arith.mulf %175, %172 : vector<16x64xf32>
    %177 = arith.mulf %176, %172 : vector<16x64xf32>
    %178 = arith.mulf %177, %172 : vector<16x64xf32>
    %179 = arith.addf %172, %178 : vector<16x64xf32>
    %cst_65 = arith.constant 0.797884583 : f32
    %180 = vector.broadcast %cst_65 : f32 to vector<16x64xf32>
    %181 = arith.mulf %180, %179 : vector<16x64xf32>
    %182 = math.tanh %181 : vector<16x64xf32>
    %cst_66 = arith.constant 1.000000e+00 : f32
    %183 = vector.broadcast %cst_66 : f32 to vector<16x64xf32>
    %184 = arith.addf %183, %182 : vector<16x64xf32>
    %185 = arith.mulf %174, %184 : vector<16x64xf32>
    %c0_67 = arith.constant 0 : index
    %c0_68 = arith.constant 0 : index
    %c0_69 = arith.constant 0 : index
    %186 = vector.load %arg13[%c0_67, %c0_68, %c0_69] : memref<2x64x32xbf16, #tpu.memory_space<vmem>>, vector<1x64x32xbf16>
    %187 = vector.shape_cast %186 : vector<1x64x32xbf16> to vector<64x32xbf16>
    %188 = arith.truncf %185 : vector<16x64xf32> to vector<16x64xbf16>
    %cst_70 = arith.constant dense<0.000000e+00> : vector<16x32xf32>
    %189 = tpu.matmul %188, %187, %cst_70 {dimension_numbers = #tpu.dot_dimension_numbers<[1], [0], [0], [1], [0, 0, 1, 1], [], []>} : vector<16x64xbf16>, vector<64x32xbf16>, vector<16x32xf32> -> vector<16x32xf32>
    %c0_71 = arith.constant 0 : index
    %c0_72 = arith.constant 0 : index
    %c0_73 = arith.constant 0 : index
    %190 = vector.load %arg14[%c0_71, %c0_72, %c0_73] : memref<2x1x32xf32, #tpu.memory_space<vmem>>, vector<1x1x32xf32>
    %191 = vector.shape_cast %190 : vector<1x1x32xf32> to vector<1x32xf32>
    %192 = vector.broadcast %191 : vector<1x32xf32> to vector<16x32xf32>
    %193 = arith.addf %189, %192 : vector<16x32xf32>
    %194 = arith.addf %164, %193 : vector<16x32xf32>
    %c0_74 = arith.constant 0 : index
    %c0_75 = arith.constant 0 : index
    %c0_76 = arith.constant 0 : index
    %195 = vector.load %arg15[%c0_74, %c0_75, %c0_76] : memref<2x1x32xf32, #tpu.memory_space<vmem>>, vector<1x1x32xf32>
    %196 = vector.shape_cast %195 : vector<1x1x32xf32> to vector<1x32xf32>
    %c0_77 = arith.constant 0 : index
    %c0_78 = arith.constant 0 : index
    %c0_79 = arith.constant 0 : index
    %197 = vector.load %arg16[%c0_77, %c0_78, %c0_79] : memref<2x1x32xf32, #tpu.memory_space<vmem>>, vector<1x1x32xf32>
    %198 = vector.shape_cast %197 : vector<1x1x32xf32> to vector<1x32xf32>
    %cst_80 = arith.constant dense<0.000000e+00> : vector<16xf32>
    %199 = vector.multi_reduction <add>, %194, %cst_80 [1] : vector<16x32xf32> to vector<16xf32>
    %200 = vector.shape_cast %199 : vector<16xf32> to vector<16x1xf32>
    %cst_81 = arith.constant 3.200000e+01 : f32
    %201 = vector.broadcast %cst_81 : f32 to vector<16x1xf32>
    %202 = arith.divf %200, %201 : vector<16x1xf32>
    %203 = vector.broadcast %202 : vector<16x1xf32> to vector<16x32xf32>
    %204 = arith.subf %194, %203 : vector<16x32xf32>
    %205 = arith.mulf %204, %204 : vector<16x32xf32>
    %cst_82 = arith.constant dense<0.000000e+00> : vector<16xf32>
    %206 = vector.multi_reduction <add>, %205, %cst_82 [1] : vector<16x32xf32> to vector<16xf32>
    %207 = vector.shape_cast %206 : vector<16xf32> to vector<16x1xf32>
    %cst_83 = arith.constant 3.200000e+01 : f32
    %208 = vector.broadcast %cst_83 : f32 to vector<16x1xf32>
    %209 = arith.divf %207, %208 : vector<16x1xf32>
    %210 = vector.broadcast %202 : vector<16x1xf32> to vector<16x32xf32>
    %211 = arith.subf %194, %210 : vector<16x32xf32>
    %cst_84 = arith.constant 9.99999996E-13 : f32
    %212 = vector.broadcast %cst_84 : f32 to vector<16x1xf32>
    %213 = arith.addf %209, %212 : vector<16x1xf32>
    %214 = math.rsqrt %213 : vector<16x1xf32>
    %215 = vector.broadcast %214 : vector<16x1xf32> to vector<16x32xf32>
    %216 = arith.mulf %211, %215 : vector<16x32xf32>
    %217 = vector.broadcast %196 : vector<1x32xf32> to vector<16x32xf32>
    %218 = arith.mulf %216, %217 : vector<16x32xf32>
    %219 = vector.broadcast %198 : vector<1x32xf32> to vector<16x32xf32>
    %220 = arith.addf %218, %219 : vector<16x32xf32>
    %c1 = arith.constant 1 : index
    %c0_85 = arith.constant 0 : index
    %c0_86 = arith.constant 0 : index
    %221 = vector.load %arg5[%c1, %c0_85, %c0_86] : memref<2x32x96xbf16, #tpu.memory_space<vmem>>, vector<1x32x96xbf16>
    %222 = vector.shape_cast %221 : vector<1x32x96xbf16> to vector<32x96xbf16>
    %223 = arith.truncf %220 : vector<16x32xf32> to vector<16x32xbf16>
    %cst_87 = arith.constant dense<0.000000e+00> : vector<16x96xf32>
    %224 = tpu.matmul %223, %222, %cst_87 {dimension_numbers = #tpu.dot_dimension_numbers<[1], [0], [0], [1], [0, 0, 1, 1], [], []>} : vector<16x32xbf16>, vector<32x96xbf16>, vector<16x96xf32> -> vector<16x96xf32>
    %c1_88 = arith.constant 1 : index
    %c0_89 = arith.constant 0 : index
    %c0_90 = arith.constant 0 : index
    %225 = vector.load %arg6[%c1_88, %c0_89, %c0_90] : memref<2x1x96xf32, #tpu.memory_space<vmem>>, vector<1x1x96xf32>
    %226 = vector.shape_cast %225 : vector<1x1x96xf32> to vector<1x96xf32>
    %227 = vector.broadcast %226 : vector<1x96xf32> to vector<16x96xf32>
    %228 = arith.addf %224, %227 : vector<16x96xf32>
    %229 = vector.extract_strided_slice %228 {offsets = [0, 0], sizes = [16, 32], strides = [1, 1]} : vector<16x96xf32> to vector<16x32xf32>
    %230 = vector.extract_strided_slice %228 {offsets = [0, 32], sizes = [16, 32], strides = [1, 1]} : vector<16x96xf32> to vector<16x32xf32>
    %231 = vector.extract_strided_slice %228 {offsets = [0, 64], sizes = [16, 32], strides = [1, 1]} : vector<16x96xf32> to vector<16x32xf32>
    %232 = vector.extract_strided_slice %25 {offsets = [0, 0], sizes = [1, 8], strides = [1, 1]} : vector<2x8xf32> to vector<1x8xf32>
    %233 = vector.extract_strided_slice %229 {offsets = [0, 0], sizes = [8, 16], strides = [1, 1]} : vector<16x32xf32> to vector<8x16xf32>
    %234 = arith.truncf %233 : vector<8x16xf32> to vector<8x16xbf16>
    %235 = vector.extract_strided_slice %230 {offsets = [0, 0], sizes = [8, 16], strides = [1, 1]} : vector<16x32xf32> to vector<8x16xf32>
    %236 = arith.truncf %235 : vector<8x16xf32> to vector<8x16xbf16>
    %237 = vector.extract_strided_slice %231 {offsets = [0, 0], sizes = [8, 16], strides = [1, 1]} : vector<16x32xf32> to vector<8x16xf32>
    %238 = arith.truncf %237 : vector<8x16xf32> to vector<8x16xbf16>
    %cst_91 = arith.constant dense<0.000000e+00> : vector<8x8xf32>
    %239 = tpu.matmul %234, %236, %cst_91 {dimension_numbers = #tpu.dot_dimension_numbers<[1], [1], [0], [0], [0, 0, 1, 0], [], []>} : vector<8x16xbf16>, vector<8x16xbf16>, vector<8x8xf32> -> vector<8x8xf32>
    %cst_92 = arith.constant 2.500000e-01 : f32
    %240 = vector.broadcast %cst_92 : f32 to vector<8x8xf32>
    %241 = arith.mulf %239, %240 : vector<8x8xf32>
    %242 = vector.broadcast %232 : vector<1x8xf32> to vector<8x8xf32>
    %243 = arith.addf %241, %242 : vector<8x8xf32>
    %cst_93 = arith.constant dense<0xFF800000> : vector<8xf32>
    %244 = vector.multi_reduction <maximumf>, %243, %cst_93 [1] : vector<8x8xf32> to vector<8xf32>
    %245 = vector.shape_cast %244 : vector<8xf32> to vector<8x1xf32>
    %246 = vector.broadcast %245 : vector<8x1xf32> to vector<8x8xf32>
    %247 = arith.subf %243, %246 : vector<8x8xf32>
    %248 = math.exp %247 : vector<8x8xf32>
    %cst_94 = arith.constant dense<0.000000e+00> : vector<8xf32>
    %249 = vector.multi_reduction <add>, %248, %cst_94 [1] : vector<8x8xf32> to vector<8xf32>
    %250 = vector.shape_cast %249 : vector<8xf32> to vector<8x1xf32>
    %251 = vector.broadcast %250 : vector<8x1xf32> to vector<8x8xf32>
    %252 = arith.divf %248, %251 : vector<8x8xf32>
    %253 = arith.truncf %252 : vector<8x8xf32> to vector<8x8xbf16>
    %cst_95 = arith.constant dense<0.000000e+00> : vector<8x16xf32>
    %254 = tpu.matmul %253, %238, %cst_95 {dimension_numbers = #tpu.dot_dimension_numbers<[1], [0], [0], [1], [0, 0, 1, 1], [], []>} : vector<8x8xbf16>, vector<8x16xbf16>, vector<8x16xf32> -> vector<8x16xf32>
    %255 = vector.extract_strided_slice %229 {offsets = [0, 16], sizes = [8, 16], strides = [1, 1]} : vector<16x32xf32> to vector<8x16xf32>
    %256 = arith.truncf %255 : vector<8x16xf32> to vector<8x16xbf16>
    %257 = vector.extract_strided_slice %230 {offsets = [0, 16], sizes = [8, 16], strides = [1, 1]} : vector<16x32xf32> to vector<8x16xf32>
    %258 = arith.truncf %257 : vector<8x16xf32> to vector<8x16xbf16>
    %259 = vector.extract_strided_slice %231 {offsets = [0, 16], sizes = [8, 16], strides = [1, 1]} : vector<16x32xf32> to vector<8x16xf32>
    %260 = arith.truncf %259 : vector<8x16xf32> to vector<8x16xbf16>
    %cst_96 = arith.constant dense<0.000000e+00> : vector<8x8xf32>
    %261 = tpu.matmul %256, %258, %cst_96 {dimension_numbers = #tpu.dot_dimension_numbers<[1], [1], [0], [0], [0, 0, 1, 0], [], []>} : vector<8x16xbf16>, vector<8x16xbf16>, vector<8x8xf32> -> vector<8x8xf32>
    %cst_97 = arith.constant 2.500000e-01 : f32
    %262 = vector.broadcast %cst_97 : f32 to vector<8x8xf32>
    %263 = arith.mulf %261, %262 : vector<8x8xf32>
    %264 = vector.broadcast %232 : vector<1x8xf32> to vector<8x8xf32>
    %265 = arith.addf %263, %264 : vector<8x8xf32>
    %cst_98 = arith.constant dense<0xFF800000> : vector<8xf32>
    %266 = vector.multi_reduction <maximumf>, %265, %cst_98 [1] : vector<8x8xf32> to vector<8xf32>
    %267 = vector.shape_cast %266 : vector<8xf32> to vector<8x1xf32>
    %268 = vector.broadcast %267 : vector<8x1xf32> to vector<8x8xf32>
    %269 = arith.subf %265, %268 : vector<8x8xf32>
    %270 = math.exp %269 : vector<8x8xf32>
    %cst_99 = arith.constant dense<0.000000e+00> : vector<8xf32>
    %271 = vector.multi_reduction <add>, %270, %cst_99 [1] : vector<8x8xf32> to vector<8xf32>
    %272 = vector.shape_cast %271 : vector<8xf32> to vector<8x1xf32>
    %273 = vector.broadcast %272 : vector<8x1xf32> to vector<8x8xf32>
    %274 = arith.divf %270, %273 : vector<8x8xf32>
    %275 = arith.truncf %274 : vector<8x8xf32> to vector<8x8xbf16>
    %cst_100 = arith.constant dense<0.000000e+00> : vector<8x16xf32>
    %276 = tpu.matmul %275, %260, %cst_100 {dimension_numbers = #tpu.dot_dimension_numbers<[1], [0], [0], [1], [0, 0, 1, 1], [], []>} : vector<8x8xbf16>, vector<8x16xbf16>, vector<8x16xf32> -> vector<8x16xf32>
    %277 = tpu.concatenate %254, %276 in 1 : vector<8x16xf32>, vector<8x16xf32> -> vector<8x32xf32>
    %278 = vector.extract_strided_slice %25 {offsets = [1, 0], sizes = [1, 8], strides = [1, 1]} : vector<2x8xf32> to vector<1x8xf32>
    %279 = vector.extract_strided_slice %229 {offsets = [8, 0], sizes = [8, 16], strides = [1, 1]} : vector<16x32xf32> to vector<8x16xf32>
    %280 = arith.truncf %279 : vector<8x16xf32> to vector<8x16xbf16>
    %281 = vector.extract_strided_slice %230 {offsets = [8, 0], sizes = [8, 16], strides = [1, 1]} : vector<16x32xf32> to vector<8x16xf32>
    %282 = arith.truncf %281 : vector<8x16xf32> to vector<8x16xbf16>
    %283 = vector.extract_strided_slice %231 {offsets = [8, 0], sizes = [8, 16], strides = [1, 1]} : vector<16x32xf32> to vector<8x16xf32>
    %284 = arith.truncf %283 : vector<8x16xf32> to vector<8x16xbf16>
    %cst_101 = arith.constant dense<0.000000e+00> : vector<8x8xf32>
    %285 = tpu.matmul %280, %282, %cst_101 {dimension_numbers = #tpu.dot_dimension_numbers<[1], [1], [0], [0], [0, 0, 1, 0], [], []>} : vector<8x16xbf16>, vector<8x16xbf16>, vector<8x8xf32> -> vector<8x8xf32>
    %cst_102 = arith.constant 2.500000e-01 : f32
    %286 = vector.broadcast %cst_102 : f32 to vector<8x8xf32>
    %287 = arith.mulf %285, %286 : vector<8x8xf32>
    %288 = vector.broadcast %278 : vector<1x8xf32> to vector<8x8xf32>
    %289 = arith.addf %287, %288 : vector<8x8xf32>
    %cst_103 = arith.constant dense<0xFF800000> : vector<8xf32>
    %290 = vector.multi_reduction <maximumf>, %289, %cst_103 [1] : vector<8x8xf32> to vector<8xf32>
    %291 = vector.shape_cast %290 : vector<8xf32> to vector<8x1xf32>
    %292 = vector.broadcast %291 : vector<8x1xf32> to vector<8x8xf32>
    %293 = arith.subf %289, %292 : vector<8x8xf32>
    %294 = math.exp %293 : vector<8x8xf32>
    %cst_104 = arith.constant dense<0.000000e+00> : vector<8xf32>
    %295 = vector.multi_reduction <add>, %294, %cst_104 [1] : vector<8x8xf32> to vector<8xf32>
    %296 = vector.shape_cast %295 : vector<8xf32> to vector<8x1xf32>
    %297 = vector.broadcast %296 : vector<8x1xf32> to vector<8x8xf32>
    %298 = arith.divf %294, %297 : vector<8x8xf32>
    %299 = arith.truncf %298 : vector<8x8xf32> to vector<8x8xbf16>
    %cst_105 = arith.constant dense<0.000000e+00> : vector<8x16xf32>
    %300 = tpu.matmul %299, %284, %cst_105 {dimension_numbers = #tpu.dot_dimension_numbers<[1], [0], [0], [1], [0, 0, 1, 1], [], []>} : vector<8x8xbf16>, vector<8x16xbf16>, vector<8x16xf32> -> vector<8x16xf32>
    %301 = vector.extract_strided_slice %229 {offsets = [8, 16], sizes = [8, 16], strides = [1, 1]} : vector<16x32xf32> to vector<8x16xf32>
    %302 = arith.truncf %301 : vector<8x16xf32> to vector<8x16xbf16>
    %303 = vector.extract_strided_slice %230 {offsets = [8, 16], sizes = [8, 16], strides = [1, 1]} : vector<16x32xf32> to vector<8x16xf32>
    %304 = arith.truncf %303 : vector<8x16xf32> to vector<8x16xbf16>
    %305 = vector.extract_strided_slice %231 {offsets = [8, 16], sizes = [8, 16], strides = [1, 1]} : vector<16x32xf32> to vector<8x16xf32>
    %306 = arith.truncf %305 : vector<8x16xf32> to vector<8x16xbf16>
    %cst_106 = arith.constant dense<0.000000e+00> : vector<8x8xf32>
    %307 = tpu.matmul %302, %304, %cst_106 {dimension_numbers = #tpu.dot_dimension_numbers<[1], [1], [0], [0], [0, 0, 1, 0], [], []>} : vector<8x16xbf16>, vector<8x16xbf16>, vector<8x8xf32> -> vector<8x8xf32>
    %cst_107 = arith.constant 2.500000e-01 : f32
    %308 = vector.broadcast %cst_107 : f32 to vector<8x8xf32>
    %309 = arith.mulf %307, %308 : vector<8x8xf32>
    %310 = vector.broadcast %278 : vector<1x8xf32> to vector<8x8xf32>
    %311 = arith.addf %309, %310 : vector<8x8xf32>
    %cst_108 = arith.constant dense<0xFF800000> : vector<8xf32>
    %312 = vector.multi_reduction <maximumf>, %311, %cst_108 [1] : vector<8x8xf32> to vector<8xf32>
    %313 = vector.shape_cast %312 : vector<8xf32> to vector<8x1xf32>
    %314 = vector.broadcast %313 : vector<8x1xf32> to vector<8x8xf32>
    %315 = arith.subf %311, %314 : vector<8x8xf32>
    %316 = math.exp %315 : vector<8x8xf32>
    %cst_109 = arith.constant dense<0.000000e+00> : vector<8xf32>
    %317 = vector.multi_reduction <add>, %316, %cst_109 [1] : vector<8x8xf32> to vector<8xf32>
    %318 = vector.shape_cast %317 : vector<8xf32> to vector<8x1xf32>
    %319 = vector.broadcast %318 : vector<8x1xf32> to vector<8x8xf32>
    %320 = arith.divf %316, %319 : vector<8x8xf32>
    %321 = arith.truncf %320 : vector<8x8xf32> to vector<8x8xbf16>
    %cst_110 = arith.constant dense<0.000000e+00> : vector<8x16xf32>
    %322 = tpu.matmul %321, %306, %cst_110 {dimension_numbers = #tpu.dot_dimension_numbers<[1], [0], [0], [1], [0, 0, 1, 1], [], []>} : vector<8x8xbf16>, vector<8x16xbf16>, vector<8x16xf32> -> vector<8x16xf32>
    %323 = tpu.concatenate %300, %322 in 1 : vector<8x16xf32>, vector<8x16xf32> -> vector<8x32xf32>
    %324 = tpu.concatenate %277, %323 in 0 : vector<8x32xf32>, vector<8x32xf32> -> vector<16x32xf32>
    %c1_111 = arith.constant 1 : index
    %c0_112 = arith.constant 0 : index
    %c0_113 = arith.constant 0 : index
    %325 = vector.load %arg7[%c1_111, %c0_112, %c0_113] : memref<2x32x32xbf16, #tpu.memory_space<vmem>>, vector<1x32x32xbf16>
    %326 = vector.shape_cast %325 : vector<1x32x32xbf16> to vector<32x32xbf16>
    %327 = arith.truncf %324 : vector<16x32xf32> to vector<16x32xbf16>
    %cst_114 = arith.constant dense<0.000000e+00> : vector<16x32xf32>
    %328 = tpu.matmul %327, %326, %cst_114 {dimension_numbers = #tpu.dot_dimension_numbers<[1], [0], [0], [1], [0, 0, 1, 1], [], []>} : vector<16x32xbf16>, vector<32x32xbf16>, vector<16x32xf32> -> vector<16x32xf32>
    %c1_115 = arith.constant 1 : index
    %c0_116 = arith.constant 0 : index
    %c0_117 = arith.constant 0 : index
    %329 = vector.load %arg8[%c1_115, %c0_116, %c0_117] : memref<2x1x32xf32, #tpu.memory_space<vmem>>, vector<1x1x32xf32>
    %330 = vector.shape_cast %329 : vector<1x1x32xf32> to vector<1x32xf32>
    %331 = vector.broadcast %330 : vector<1x32xf32> to vector<16x32xf32>
    %332 = arith.addf %328, %331 : vector<16x32xf32>
    %333 = arith.addf %220, %332 : vector<16x32xf32>
    %c1_118 = arith.constant 1 : index
    %c0_119 = arith.constant 0 : index
    %c0_120 = arith.constant 0 : index
    %334 = vector.load %arg9[%c1_118, %c0_119, %c0_120] : memref<2x1x32xf32, #tpu.memory_space<vmem>>, vector<1x1x32xf32>
    %335 = vector.shape_cast %334 : vector<1x1x32xf32> to vector<1x32xf32>
    %c1_121 = arith.constant 1 : index
    %c0_122 = arith.constant 0 : index
    %c0_123 = arith.constant 0 : index
    %336 = vector.load %arg10[%c1_121, %c0_122, %c0_123] : memref<2x1x32xf32, #tpu.memory_space<vmem>>, vector<1x1x32xf32>
    %337 = vector.shape_cast %336 : vector<1x1x32xf32> to vector<1x32xf32>
    %cst_124 = arith.constant dense<0.000000e+00> : vector<16xf32>
    %338 = vector.multi_reduction <add>, %333, %cst_124 [1] : vector<16x32xf32> to vector<16xf32>
    %339 = vector.shape_cast %338 : vector<16xf32> to vector<16x1xf32>
    %cst_125 = arith.constant 3.200000e+01 : f32
    %340 = vector.broadcast %cst_125 : f32 to vector<16x1xf32>
    %341 = arith.divf %339, %340 : vector<16x1xf32>
    %342 = vector.broadcast %341 : vector<16x1xf32> to vector<16x32xf32>
    %343 = arith.subf %333, %342 : vector<16x32xf32>
    %344 = arith.mulf %343, %343 : vector<16x32xf32>
    %cst_126 = arith.constant dense<0.000000e+00> : vector<16xf32>
    %345 = vector.multi_reduction <add>, %344, %cst_126 [1] : vector<16x32xf32> to vector<16xf32>
    %346 = vector.shape_cast %345 : vector<16xf32> to vector<16x1xf32>
    %cst_127 = arith.constant 3.200000e+01 : f32
    %347 = vector.broadcast %cst_127 : f32 to vector<16x1xf32>
    %348 = arith.divf %346, %347 : vector<16x1xf32>
    %349 = vector.broadcast %341 : vector<16x1xf32> to vector<16x32xf32>
    %350 = arith.subf %333, %349 : vector<16x32xf32>
    %cst_128 = arith.constant 9.99999996E-13 : f32
    %351 = vector.broadcast %cst_128 : f32 to vector<16x1xf32>
    %352 = arith.addf %348, %351 : vector<16x1xf32>
    %353 = math.rsqrt %352 : vector<16x1xf32>
    %354 = vector.broadcast %353 : vector<16x1xf32> to vector<16x32xf32>
    %355 = arith.mulf %350, %354 : vector<16x32xf32>
    %356 = vector.broadcast %335 : vector<1x32xf32> to vector<16x32xf32>
    %357 = arith.mulf %355, %356 : vector<16x32xf32>
    %358 = vector.broadcast %337 : vector<1x32xf32> to vector<16x32xf32>
    %359 = arith.addf %357, %358 : vector<16x32xf32>
    %c1_129 = arith.constant 1 : index
    %c0_130 = arith.constant 0 : index
    %c0_131 = arith.constant 0 : index
    %360 = vector.load %arg11[%c1_129, %c0_130, %c0_131] : memref<2x32x64xbf16, #tpu.memory_space<vmem>>, vector<1x32x64xbf16>
    %361 = vector.shape_cast %360 : vector<1x32x64xbf16> to vector<32x64xbf16>
    %362 = arith.truncf %359 : vector<16x32xf32> to vector<16x32xbf16>
    %cst_132 = arith.constant dense<0.000000e+00> : vector<16x64xf32>
    %363 = tpu.matmul %362, %361, %cst_132 {dimension_numbers = #tpu.dot_dimension_numbers<[1], [0], [0], [1], [0, 0, 1, 1], [], []>} : vector<16x32xbf16>, vector<32x64xbf16>, vector<16x64xf32> -> vector<16x64xf32>
    %c1_133 = arith.constant 1 : index
    %c0_134 = arith.constant 0 : index
    %c0_135 = arith.constant 0 : index
    %364 = vector.load %arg12[%c1_133, %c0_134, %c0_135] : memref<2x1x64xf32, #tpu.memory_space<vmem>>, vector<1x1x64xf32>
    %365 = vector.shape_cast %364 : vector<1x1x64xf32> to vector<1x64xf32>
    %366 = vector.broadcast %365 : vector<1x64xf32> to vector<16x64xf32>
    %367 = arith.addf %363, %366 : vector<16x64xf32>
    %cst_136 = arith.constant 5.000000e-01 : f32
    %368 = vector.broadcast %cst_136 : f32 to vector<16x64xf32>
    %369 = arith.mulf %368, %367 : vector<16x64xf32>
    %cst_137 = arith.constant 4.471500e-02 : f32
    %370 = vector.broadcast %cst_137 : f32 to vector<16x64xf32>
    %371 = arith.mulf %370, %367 : vector<16x64xf32>
    %372 = arith.mulf %371, %367 : vector<16x64xf32>
    %373 = arith.mulf %372, %367 : vector<16x64xf32>
    %374 = arith.addf %367, %373 : vector<16x64xf32>
    %cst_138 = arith.constant 0.797884583 : f32
    %375 = vector.broadcast %cst_138 : f32 to vector<16x64xf32>
    %376 = arith.mulf %375, %374 : vector<16x64xf32>
    %377 = math.tanh %376 : vector<16x64xf32>
    %cst_139 = arith.constant 1.000000e+00 : f32
    %378 = vector.broadcast %cst_139 : f32 to vector<16x64xf32>
    %379 = arith.addf %378, %377 : vector<16x64xf32>
    %380 = arith.mulf %369, %379 : vector<16x64xf32>
    %c1_140 = arith.constant 1 : index
    %c0_141 = arith.constant 0 : index
    %c0_142 = arith.constant 0 : index
    %381 = vector.load %arg13[%c1_140, %c0_141, %c0_142] : memref<2x64x32xbf16, #tpu.memory_space<vmem>>, vector<1x64x32xbf16>
    %382 = vector.shape_cast %381 : vector<1x64x32xbf16> to vector<64x32xbf16>
    %383 = arith.truncf %380 : vector<16x64xf32> to vector<16x64xbf16>
    %cst_143 = arith.constant dense<0.000000e+00> : vector<16x32xf32>
    %384 = tpu.matmul %383, %382, %cst_143 {dimension_numbers = #tpu.dot_dimension_numbers<[1], [0], [0], [1], [0, 0, 1, 1], [], []>} : vector<16x64xbf16>, vector<64x32xbf16>, vector<16x32xf32> -> vector<16x32xf32>
    %c1_144 = arith.constant 1 : index
    %c0_145 = arith.constant 0 : index
    %c0_146 = arith.constant 0 : index
    %385 = vector.load %arg14[%c1_144, %c0_145, %c0_146] : memref<2x1x32xf32, #tpu.memory_space<vmem>>, vector<1x1x32xf32>
    %386 = vector.shape_cast %385 : vector<1x1x32xf32> to vector<1x32xf32>
    %387 = vector.broadcast %386 : vector<1x32xf32> to vector<16x32xf32>
    %388 = arith.addf %384, %387 : vector<16x32xf32>
    %389 = arith.addf %359, %388 : vector<16x32xf32>
    %c1_147 = arith.constant 1 : index
    %c0_148 = arith.constant 0 : index
    %c0_149 = arith.constant 0 : index
    %390 = vector.load %arg15[%c1_147, %c0_148, %c0_149] : memref<2x1x32xf32, #tpu.memory_space<vmem>>, vector<1x1x32xf32>
    %391 = vector.shape_cast %390 : vector<1x1x32xf32> to vector<1x32xf32>
    %c1_150 = arith.constant 1 : index
    %c0_151 = arith.constant 0 : index
    %c0_152 = arith.constant 0 : index
    %392 = vector.load %arg16[%c1_150, %c0_151, %c0_152] : memref<2x1x32xf32, #tpu.memory_space<vmem>>, vector<1x1x32xf32>
    %393 = vector.shape_cast %392 : vector<1x1x32xf32> to vector<1x32xf32>
    %cst_153 = arith.constant dense<0.000000e+00> : vector<16xf32>
    %394 = vector.multi_reduction <add>, %389, %cst_153 [1] : vector<16x32xf32> to vector<16xf32>
    %395 = vector.shape_cast %394 : vector<16xf32> to vector<16x1xf32>
    %cst_154 = arith.constant 3.200000e+01 : f32
    %396 = vector.broadcast %cst_154 : f32 to vector<16x1xf32>
    %397 = arith.divf %395, %396 : vector<16x1xf32>
    %398 = vector.broadcast %397 : vector<16x1xf32> to vector<16x32xf32>
    %399 = arith.subf %389, %398 : vector<16x32xf32>
    %400 = arith.mulf %399, %399 : vector<16x32xf32>
    %cst_155 = arith.constant dense<0.000000e+00> : vector<16xf32>
    %401 = vector.multi_reduction <add>, %400, %cst_155 [1] : vector<16x32xf32> to vector<16xf32>
    %402 = vector.shape_cast %401 : vector<16xf32> to vector<16x1xf32>
    %cst_156 = arith.constant 3.200000e+01 : f32
    %403 = vector.broadcast %cst_156 : f32 to vector<16x1xf32>
    %404 = arith.divf %402, %403 : vector<16x1xf32>
    %405 = vector.broadcast %397 : vector<16x1xf32> to vector<16x32xf32>
    %406 = arith.subf %389, %405 : vector<16x32xf32>
    %cst_157 = arith.constant 9.99999996E-13 : f32
    %407 = vector.broadcast %cst_157 : f32 to vector<16x1xf32>
    %408 = arith.addf %404, %407 : vector<16x1xf32>
    %409 = math.rsqrt %408 : vector<16x1xf32>
    %410 = vector.broadcast %409 : vector<16x1xf32> to vector<16x32xf32>
    %411 = arith.mulf %406, %410 : vector<16x32xf32>
    %412 = vector.broadcast %391 : vector<1x32xf32> to vector<16x32xf32>
    %413 = arith.mulf %411, %412 : vector<16x32xf32>
    %414 = vector.broadcast %393 : vector<1x32xf32> to vector<16x32xf32>
    %415 = arith.addf %413, %414 : vector<16x32xf32>
    %416 = vector.extract_strided_slice %415 {offsets = [0, 0], sizes = [1, 32], strides = [1, 1]} : vector<16x32xf32> to vector<1x32xf32>
    %417 = vector.extract_strided_slice %415 {offsets = [8, 0], sizes = [1, 32], strides = [1, 1]} : vector<16x32xf32> to vector<1x32xf32>
    %418 = tpu.concatenate %416, %417 in 0 : vector<1x32xf32>, vector<1x32xf32> -> vector<2x32xf32>
    %c0_158 = arith.constant 0 : index
    %c0_159 = arith.constant 0 : index
    %419 = vector.load %arg17[%c0_158, %c0_159] : memref<32x50xbf16, #tpu.memory_space<vmem>>, vector<32x50xbf16>
    %420 = arith.truncf %418 : vector<2x32xf32> to vector<2x32xbf16>
    %cst_160 = arith.constant dense<0.000000e+00> : vector<2x50xf32>
    %421 = tpu.matmul %420, %419, %cst_160 {dimension_numbers = #tpu.dot_dimension_numbers<[1], [0], [0], [1], [0, 0, 1, 1], [], []>} : vector<2x32xbf16>, vector<32x50xbf16>, vector<2x50xf32> -> vector<2x50xf32>
    %c0_161 = arith.constant 0 : index
    %c0_162 = arith.constant 0 : index
    %422 = vector.load %arg18[%c0_161, %c0_162] : memref<1x50xf32, #tpu.memory_space<vmem>>, vector<1x50xf32>
    %423 = vector.broadcast %422 : vector<1x50xf32> to vector<2x50xf32>
    %424 = arith.addf %421, %423 : vector<2x50xf32>
    %cst_163 = arith.constant 0.000000e+00 : f32
    %425 = vector.broadcast %cst_163 : f32 to vector<2x50xf32>
    %426 = arith.maximumf %424, %425 : vector<2x50xf32>
    %c0_164 = arith.constant 0 : index
    %c0_165 = arith.constant 0 : index
    %427 = vector.load %arg19[%c0_164, %c0_165] : memref<50x2xbf16, #tpu.memory_space<vmem>>, vector<50x2xbf16>
    %428 = arith.truncf %426 : vector<2x50xf32> to vector<2x50xbf16>
    %cst_166 = arith.constant dense<0.000000e+00> : vector<2x2xf32>
    %429 = tpu.matmul %428, %427, %cst_166 {dimension_numbers = #tpu.dot_dimension_numbers<[1], [0], [0], [1], [0, 0, 1, 1], [], []>} : vector<2x50xbf16>, vector<50x2xbf16>, vector<2x2xf32> -> vector<2x2xf32>
    %c0_167 = arith.constant 0 : index
    %c0_168 = arith.constant 0 : index
    %430 = vector.load %arg20[%c0_167, %c0_168] : memref<1x2xf32, #tpu.memory_space<vmem>>, vector<1x2xf32>
    %431 = vector.broadcast %430 : vector<1x2xf32> to vector<2x2xf32>
    %432 = arith.addf %429, %431 : vector<2x2xf32>
    %c0_169 = arith.constant 0 : index
    %c0_170 = arith.constant 0 : index
    %433 = vector.load %arg21[%c0_169, %c0_170] : memref<2x2xf32, #tpu.memory_space<vmem>>, vector<2x2xf32>
    tpu.vector_store %arg21[%c0_169, %c0_170], %432 {strides = array<i32>} : memref<2x2xf32, #tpu.memory_space<vmem>>, vector<2x2xf32>,
    %c0_171 = arith.constant 0 : index
    %c0_172 = arith.constant 0 : index
    %434 = vector.load %arg2[%c0_171, %c0_172] : memref<2x1xi32, #tpu.memory_space<vmem>>, vector<2x1xi32>
    %cst_173 = arith.constant dense<0xFF800000> : vector<2xf32>
    %435 = vector.multi_reduction <maximumf>, %432, %cst_173 [1] : vector<2x2xf32> to vector<2xf32>
    %436 = vector.shape_cast %435 : vector<2xf32> to vector<2x1xf32>
    %437 = vector.broadcast %436 : vector<2x1xf32> to vector<2x2xf32>
    %438 = arith.subf %432, %437 : vector<2x2xf32>
    %439 = math.exp %438 : vector<2x2xf32>
    %cst_174 = arith.constant dense<0.000000e+00> : vector<2xf32>
    %440 = vector.multi_reduction <add>, %439, %cst_174 [1] : vector<2x2xf32> to vector<2xf32>
    %441 = vector.shape_cast %440 : vector<2xf32> to vector<2x1xf32>
    %442 = math.log %441 : vector<2x1xf32>
    %443 = arith.addf %436, %442 : vector<2x1xf32>
    %444 = tpu.iota {dimensions = array<i32: 1>} : vector<2x2xi32>
    %445 = vector.broadcast %434 : vector<2x1xi32> to vector<2x2xi32>
    %446 = arith.cmpi eq, %444, %445 : vector<2x2xi32>
    %cst_175 = arith.constant 0.000000e+00 : f32
    %447 = vector.broadcast %cst_175 : f32 to vector<2x2xf32>
    %448 = arith.select %446, %432, %447 : vector<2x2xi1>, vector<2x2xf32>
    %cst_176 = arith.constant dense<0.000000e+00> : vector<2xf32>
    %449 = vector.multi_reduction <add>, %448, %cst_176 [1] : vector<2x2xf32> to vector<2xf32>
    %450 = vector.shape_cast %449 : vector<2xf32> to vector<2x1xf32>
    %451 = arith.subf %443, %450 : vector<2x1xf32>
    %452 = vector.shape_cast %451 : vector<2x1xf32> to vector<1x2x1xf32>
    %cst_177 = arith.constant dense<0.000000e+00> : vector<1xf32>
    %453 = vector.multi_reduction <add>, %452, %cst_177 [1, 2] : vector<1x2x1xf32> to vector<1xf32>
    %454 = vector.shape_cast %453 : vector<1xf32> to vector<1x1x1xf32>
    %455 = vector.extract %454[0, 0, 0] : f32 from vector<1x1x1xf32>
    %cst_178 = arith.constant 2.000000e+00 : f32
    %456 = arith.divf %455, %cst_178 : f32
    %c0_179 = arith.constant 0 : index
    %c0_180 = arith.constant 0 : index
    %457 = memref.load %arg22[%c0_179, %c0_180] : memref<1x1xf32, #tpu.memory_space<smem>>
    memref.store %456, %arg22[%c0_179, %c0_180] : memref<1x1xf32, #tpu.memory_space<smem>>
    return
  }
}

</mosaic_0001>

<bundles_post_ra>
// kernel: bert_seq_classifier_forward.1
= control target key start
LH: loop header
LB: loop body
LE: loop exit
PB: predicated region body
PF: predicated region fallthrough
CT: control target
= control target key end

     0   :  { %s3131_s0 = inlined_call_operand.vmem [shape: f32[16,32], index: 0, kind: input, shape index: {}]   ;;  %s3132_s1 = inlined_call_operand.vmem [shape: f32[2,8], index: 1, kind: input, shape index: {}]   ;;  %s3133_s2 = inlined_call_operand.vmem [shape: s32[2,1], index: 2, kind: input, shape index: {}]   ;;  %s3134_s3 = inlined_call_operand.vmem [shape: f32[1,32], index: 3, kind: input, shape index: {}]   ;;  %s3135_s4 = inlined_call_operand.vmem [shape: f32[1,32], index: 4, kind: input, shape index: {}]   ;;  %s3136_s5 = inlined_call_operand.vmem [shape: bf16[2,32,96], index: 5, kind: input, shape index: {}]   ;;  %s3137_s6 = inlined_call_operand.vmem [shape: f32[2,1,96], index: 6, kind: input, shape index: {}]   ;;  %s3138_s7 = inlined_call_operand.vmem [shape: bf16[2,32,32], index: 7, kind: input, shape index: {}]   ;;  %s3139_s8 = inlined_call_operand.vmem [shape: f32[2,1,32], index: 8, kind: input, shape index: {}]   ;;  %s3140_s9 = inlined_call_operand.vmem [shape: f32[2,1,32], index: 9, kind: input, shape index: {}]   ;;  %s3141_s10 = inlined_call_operand.vmem [shape: f32[2,1,32], index: 10, kind: input, shape index: {}]   ;;  %s3142_s11 = inlined_call_operand.vmem [shape: bf16[2,32,64], index: 11, kind: input, shape index: {}]   ;;  %s3143_s12 = inlined_call_operand.vmem [shape: f32[2,1,64], index: 12, kind: input, shape index: {}]   ;;  %s3144_s13 = inlined_call_operand.vmem [shape: bf16[2,64,32], index: 13, kind: input, shape index: {}]   ;;  %s3145_s14 = inlined_call_operand.vmem [shape: f32[2,1,32], index: 14, kind: input, shape index: {}]   ;;  %s3146_s15 = inlined_call_operand.vmem [shape: f32[2,1,32], index: 15, kind: input, shape index: {}]   ;;  %s3147_s16 = inlined_call_operand.vmem [shape: f32[2,1,32], index: 16, kind: input, shape index: {}]   ;;  %s3148_s17 = inlined_call_operand.vmem [shape: bf16[32,50], index: 17, kind: input, shape index: {}]   ;;  %s3149_s18 = inlined_call_operand.vmem [shape: f32[1,50], index: 18, kind: input, shape index: {}]   ;;  %s3150_s19 = inlined_call_operand.vmem [shape: bf16[50,2], index: 19, kind: input, shape index: {}]   ;;  %s3151_s20 = inlined_call_operand.vmem [shape: f32[1,2], index: 20, kind: input, shape index: {}]   ;;  %s3152_s21 = inlined_call_operand.hbm [shape: f32[2,2], index: 21, kind: output, shape index: {0}]   ;;  %s3153_s22 = inlined_call_operand.hbm [shape: f32[1,1], index: 22, kind: output, shape index: {1}]  }
   0x1   :  { %3158 = sst [smem:[#allocation8_spill]] %s3131_s0 }
   0x2   :  { %3159 = sst [smem:[#allocation9_spill]] %s3132_s1 }
   0x3   :  { %3160 = sst [smem:[#allocation10_spill]] %s3133_s2 }
   0x4   :  { %3161 = sst [smem:[#allocation11_spill]] %s3134_s3 }
   0x5   :  { %3162 = sst [smem:[#allocation12_spill]] %s3135_s4 }
   0x6   :  { %3163 = sst [smem:[#allocation13_spill]] %s3136_s5 }
   0x7   :  { %3164 = sst [smem:[#allocation14_spill]] %s3137_s6 }
   0x8   :  { %28 = vsyncpa [#allocation3], 0  ;;  %s3165_s29 = sld [smem:[#allocation8_spill]]  ;;  %vm77_vm0 = vcmask 261120  }
   0xe   :  { %v73_v0 = vld [vmem:[%s3165_s29] sm:$0xff]  ;;  %v74_v1 = vld [vmem:[%s3165_s29 + $0x8] sm:$0xff] }
   0xf   :  { %v78_v2 = vsel %vm77_vm0, %v73_v0, 0.0  ;;  %v81_v3 = vsel %vm77_vm0, %v74_v1, 0.0 }
  0x10   :  { %79 = vadd.xlane.f32.xlu0 %v78_v2 }
  0x14   :  { %82 = vadd.xlane.f32.xlu0 %v81_v3 }
  0x15   :  { %29 = vsyncpa [#allocation4], 0  ;;  %s3166_s1 = sld [smem:[#allocation13_spill]]  ;;  %v2586_v15 = vmov 0.0   ;;  %vm2587_vm1 = vmmov 0   ;;  %s2588_s4 = smov 80   ;;  %v242_v53 = vlaneseq }
  0x16   :  { %2251 = vmatprep.subr.bf16.mxu0 %v2586_v15  ;;  %2255 = vmatprep.mubr.msk.bf16.mxu0 %vm2587_vm1, %v2586_v15  ;;  %s3167_s26 = sld [smem:[#allocation11_spill]]  ;;  %s2589_s0 = smov 96   ;;  %vm194_vm2 = vcmask 130048   ;;  %vm247_vm3 = vcmask 64512   ;;  %vm265_vm4 = vcmask 1043456   ;;  %vm899_vm5 = vcmask 523264  }
  0x17   :  { %2259 = vmatprep.subr.bf16.mxu1 %v2586_v15  ;;  %2261 = vmatprep.mubr.msk.bf16.mxu1 %vm2587_vm1, %v2586_v15  ;;  %s3168_s3 = sld [smem:[#allocation12_spill]]  ;;  %s2590_s23 = smov 112   ;;  %v243_v54 = vshrl.u32 %v242_v53, 7  ;;  %vm1861_vm6 = vcmask 1040384   ;;  %vm1967_vm7 = vcmask 408576   ;;  %vm2014_vm8 = vcmask 9216  }
  0x18   :  { %s3169_s30 = sld [smem:[#allocation14_spill]]  ;;  %s2591_s25 = smov 48   ;;  %vm2040_vm10 = vcmask 1024  }
  0x19   :  { %v244_v55 = vsub.s32 0, %v243_v54  ;;  %s3170_s6 = sld [smem:[#allocation9_spill]]  ;;  %s3157_s29 = smov 16  }
  0x1b   :  { %v2464_v14 = vld [vmem:[%s3166_s1 + $0x8] sm:$0xff]   ;;  %v2465_v16 = vld [vmem:[%s3166_s1] sm:$0xff]  }
  0x1c   :  { %2252 = vmatpush3.bf16.msra.mxu0 %v2464_v14  ;;  %v2083_v25 = vld [vmem:[%s3167_s26] ss:$0 sm:$0xff]  ;;  %s2592_s26 = smov 64  }
  0x1d   :  { %2253 = vmatprep.subr.bf16.mxu0 %v2586_v15  ;;  %v2084_v29 = vld [vmem:[%s3168_s3] ss:$0 sm:$0xff] }
  0x1e   :  { %v2085_v34 = vld [vmem:[%s3169_s30] ss:$0 sm:$0xff] }
  0x1f   :  { %v121_v56 = vld [vmem:[%s3170_s6] sm:$0x3] }
  0x20   :  { %2254 = vmatpush3.bf16.msra.mxu0 %v2465_v16  ;;  %v2796_v57 = vrot.slane %v121_v56, %v244_v55 }
  0x21   :  { %2265 = vmatprep.subr.bf16.mxu0 %v2586_v15 }
  0x99   :  { %v80_v4 = vpop.xlane.xlu0 %79 }
  0x9a   :  { %v85_v5 = vmul.f32 0.03125, %v80_v4 }
  0x9c   :  { %v87_v6 = vsub.f32 %v73_v0, %v85_v5  ;;  %v479_v5 = vsub.s32 1, %v243_v54 }
  0x9d   :  { %v83_v7 = vpop.xlane.xlu0 %82 }
  0x9e   :  { %v86_v8 = vmul.f32 0.03125, %v83_v7  ;;  %v89_v9 = vmul.f32 %v87_v6, %v87_v6 }
  0xa0   :  { %v88_v10 = vsub.f32 %v74_v1, %v86_v8  ;;  %v91_v11 = vsel %vm77_vm0, %v89_v9, 0.0  ;;  %v2802_v9 = vrot.slane %v121_v56, %v479_v5 }
  0xa1   :  { %92 = vadd.xlane.f32.xlu1 %v91_v11 }
  0xa2   :  { %v90_v12 = vmul.f32 %v88_v10, %v88_v10 }
  0xa4   :  { %v94_v13 = vsel %vm77_vm0, %v90_v12, 0.0 }
  0xa5   :  { %95 = vadd.xlane.f32.xlu1 %v94_v13 }
 0x12a   :  { %v93_v17 = vpop.xlane.xlu1 %92 }
 0x12b   :  { %v97_v18 = vmul.f32 0.03125, %v93_v17 }
 0x12d   :  { %v99_v19 = vadd.f32 1e-12, %v97_v18 }
 0x12e   :  { %v96_v20 = vpop.xlane.xlu1 %95 }
 0x12f   :  { %2490 = vrsqrt.f32 %v99_v19  ;;  %v98_v21 = vmul.f32 0.03125, %v96_v20 }
 0x131   :  { %v100_v22 = vadd.f32 1e-12, %v98_v21 }
 0x133   :  { %2492 = vrsqrt.f32 %v100_v22 }
 0x13c   :  { %v2491_v23 = vpop.eup %2490 }
 0x13d   :  { %v103_v24 = vmul.f32 %v2491_v23, %v87_v6 }
 0x13f   :  { %v111_v28 = vmul.f32 %v2083_v25, %v103_v24 }
 0x140   :  { %v2493_v26 = vpop.eup %2492 }
 0x141   :  { %v104_v27 = vmul.f32 %v2493_v26, %v88_v10  ;;  %v2742_v31 = vadd.f32 %v2084_v29, %v111_v28 }
 0x143   :  { %v112_v30 = vmul.f32 %v2083_v25, %v104_v27 }
 0x145   :  { %v2744_v32 = vadd.f32 %v2084_v29, %v112_v30 }
 0x147   :  { %v126_v33 = vpack.c.bf16 %v2744_v32, %v2742_v31 }
 0x149   :  { %2256 = vmatmul.mubr.msk.bf16.vlgmr.msra.gmra.mxu0 %vm77_vm0, %v126_v33 }
 0x14a   :  { %2267 = vmatprep.mubr.msk.bf16.mxu0 %vm2587_vm1, %v2586_v15 }
 0x209   :  { %v183_v35 = vpop.f32.mrf.mxu0 }
 0x20a   :  { %v184_v36 = vadd.f32 %v2085_v34, %v183_v35 }
 0x20b   :  { %v2257_v37 = vpop.f32.mrf.mxu0 }
 0x20c   :  { %v2754_v38 = vpack.c.bf16 %v184_v36, %v184_v36 }
 0x20d   :  { %v186_v39 = vpop.f32.mrf.mxu0 }
 0x20e   :  { %v187_v40 = vadd.f32 %v2085_v34, %v186_v39  ;;  %311 = vrot.lane.b32.xlu1 %v2754_v38, %s2588_s4  ;;  %192 = vrot.lane.b32.xlu0 %v2754_v38, %s2589_s0 }
 0x20f   :  { %v2258_v41 = vpop.f32.mrf.mxu0 }
 0x210   :  { %v2760_v42 = vpack.c.bf16 %v187_v40, %v187_v40 }
 0x212   :  { %309 = vrot.lane.b32.xlu1 %v2754_v38, %s2590_s23  ;;  %544 = vrot.lane.b32.xlu0 %v2760_v42, %s2588_s4 }
 0x216   :  { %428 = vrot.lane.b32.xlu1 %v2760_v42, %s2589_s0 }
 0x21a   :  { %542 = vrot.lane.b32.xlu1 %v2760_v42, %s2590_s23 }
 0x280   :  { %v193_v43 = vpop.permute.xlu0 %192  ;;  %v312_v45 = vpop.permute.xlu1 %311 }
 0x281   :  { %v199_v44 = vsel %vm194_vm2, %v193_v43, 0  ;;  %v317_v47 = vsel %vm194_vm2, %v312_v45, 0 }
 0x282   :  { %2260 = vmatpush3.bf16.xpose.msra.mxu1 %v199_v44 }
 0x283   :  { %2271 = vmatprep.subr.bf16.mxu1 %v2586_v15 }
 0x284   :  { %v310_v46 = vpop.permute.xlu1 %309  ;;  %v545_v50 = vpop.permute.xlu0 %544 }
 0x285   :  { %v550_v51 = vsel %vm194_vm2, %v545_v50, 0 }
 0x288   :  { %v429_v48 = vpop.permute.xlu1 %428 }
 0x289   :  { %2262 = vmatmul.mubr.msk.bf16.vlgmr.msra.gmra.mxu1 %vm194_vm2, %v2754_v38  ;;  %v434_v49 = vsel %vm194_vm2, %v429_v48, 0 }
 0x28a   :  { %2272 = vmatpush3.bf16.xpose.msra.mxu1 %v317_v47  ;;  %2273 = vmatprep.mubr.msk.bf16.mxu1 %vm2587_vm1, %v2586_v15 }
 0x28b   :  { %2283 = vmatprep.subr.bf16.mxu1 %v2586_v15 }
 0x28c   :  { %v543_v52 = vpop.permute.xlu1 %542 }
 0x291   :  { %2274 = vmatmul.mubr.msk.bf16.vlgmr.msra.gmra.mxu1 %vm194_vm2, %v310_v46 }
 0x292   :  { %2284 = vmatpush3.bf16.xpose.msra.mxu1 %v434_v49  ;;  %2285 = vmatprep.mubr.msk.bf16.mxu1 %vm2587_vm1, %v2586_v15 }
 0x293   :  { %2295 = vmatprep.subr.bf16.mxu1 %v2586_v15 }
 0x299   :  { %2286 = vmatmul.mubr.msk.bf16.vlgmr.msra.gmra.mxu1 %vm194_vm2, %v2760_v42 }
 0x29a   :  { %2296 = vmatpush3.bf16.xpose.msra.mxu1 %v550_v51  ;;  %2297 = vmatprep.mubr.msk.bf16.mxu1 %vm2587_vm1, %v2586_v15 }
 0x29b   :  { %2307 = vmatprep.subr.bf16.mxu1 %v2586_v15 }
 0x2a1   :  { %2298 = vmatmul.mubr.msk.bf16.vlgmr.msra.gmra.mxu1 %vm194_vm2, %v543_v52 }
 0x2a2   :  { %2311 = vmatprep.mubr.msk.bf16.mxu1 %vm2587_vm1, %v2586_v15 }
 0x349   :  { %v235_v58 = vpop.f32.mrf.mxu1 }
 0x34a   :  { %v241_v59 = vmul.f32 0.25, %v235_v58 }
 0x34b   :  { %v2263_v60 = vpop.f32.mrf.mxu1 }
 0x34c   :  { %v246_v61 = vadd.f32 %v2796_v57, %v241_v59 }
 0x34d   :  { %v238_v62 = vpop.f32.mrf.mxu1 }
 0x34e   :  { %v248_v63 = vsel %vm247_vm3, %v246_v61, -inf }
 0x34f   :  { %v2264_v0 = vpop.f32.mrf.mxu1  ;;  %249 = vmax.xlane.f32.xlu0 %v248_v63 }
 0x351   :  { %v353_v1 = vpop.f32.mrf.mxu1 }
 0x352   :  { %v359_v2 = vmul.f32 0.25, %v353_v1 }
 0x353   :  { %v2275_v3 = vpop.f32.mrf.mxu1 }
 0x354   :  { %v360_v4 = vadd.f32 %v359_v2, %v2796_v57 }
 0x355   :  { %v356_v6 = vpop.f32.mrf.mxu1 }
 0x356   :  { %v361_v7 = vsel %vm247_vm3, %v360_v4, -inf }
 0x357   :  { %v2276_v8 = vpop.f32.mrf.mxu1  ;;  %362 = vmax.xlane.f32.xlu1 %v361_v7 }
 0x359   :  { %v470_v10 = vpop.f32.mrf.mxu1 }
 0x35a   :  { %v476_v11 = vmul.f32 0.25, %v470_v10  ;;  %v2466_v10 = vld [vmem:[%s3138_s7 + $0x8] sm:$0xff]  }
 0x35b   :  { %v2287_v12 = vpop.f32.mrf.mxu1  ;;  %2308 = vmatpush3.bf16.msra.mxu1 %v2466_v10  ;;  %v2102_v10 = vld [vmem:[%s3141_s10] ss:$0 sm:$0xff] }
 0x35c   :  { %v481_v13 = vadd.f32 %v2802_v9, %v476_v11  ;;  %2309 = vmatprep.subr.bf16.mxu1 %v2586_v15 }
 0x35d   :  { %v473_v14 = vpop.f32.mrf.mxu1 }
 0x35e   :  { %v482_v16 = vsel %vm247_vm3, %v481_v13, -inf }
 0x35f   :  { %483 = vmax.xlane.f32.xlu0 %v482_v16  ;;  %v2288_v17 = vpop.f32.mrf.mxu1 }
 0x361   :  { %v586_v18 = vpop.f32.mrf.mxu1 }
 0x362   :  { %v592_v19 = vmul.f32 0.25, %v586_v18 }
 0x363   :  { %v2299_v20 = vpop.f32.mrf.mxu1 }
 0x364   :  { %v593_v21 = vadd.f32 %v592_v19, %v2802_v9 }
 0x365   :  { %v589_v22 = vpop.f32.mrf.mxu1 }
 0x366   :  { %v594_v23 = vsel %vm247_vm3, %v593_v21, -inf }
 0x367   :  { %595 = vmax.xlane.f32.xlu0 %v594_v23  ;;  %v2300_v24 = vpop.f32.mrf.mxu1 }
 0x368   :  { %v2467_v24 = vld [vmem:[%s3138_s7] sm:$0xff]  }
 0x369   :  { %2310 = vmatpush3.bf16.msra.mxu1 %v2467_v24 }
 0x36a   :  { %2323 = vmatprep.subr.bf16.mxu1 %v2586_v15 }
 0x3d8   :  { %v250_v25 = vpop.xlane.xlu0 %249 }
 0x3d9   :  { %v251_v26 = vsub.f32 %v246_v61, %v250_v25 }
 0x3db   :  { %v252_v27 = vmul.f32 1.442695, %v251_v26 }
 0x3dd   :  { %2494 = vpow2.f32 %v252_v27 }
 0x3e0   :  { %v363_v28 = vpop.xlane.xlu1 %362 }
 0x3e1   :  { %v364_v29 = vsub.f32 %v360_v4, %v363_v28 }
 0x3e3   :  { %v365_v30 = vmul.f32 1.442695, %v364_v29 }
 0x3e5   :  { %2496 = vpow2.f32 %v365_v30 }
 0x3e8   :  { %v484_v33 = vpop.xlane.xlu0 %483 }
 0x3e9   :  { %v485_v34 = vsub.f32 %v481_v13, %v484_v33 }
 0x3ea   :  { %v2495_v35 = vpop.eup %2494 }
 0x3eb   :  { %v486_v36 = vmul.f32 1.442695, %v485_v34  ;;  %v254_v37 = vsel %vm247_vm3, %v2495_v35, 0.0 }
 0x3ec   :  { %255 = vadd.xlane.f32.xlu0 %v254_v37 }
 0x3ed   :  { %2498 = vpow2.f32 %v486_v36 }
 0x3f0   :  { %v596_v44 = vpop.xlane.xlu0 %595 }
 0x3f1   :  { %v597_v45 = vsub.f32 %v593_v21, %v596_v44 }
 0x3f2   :  { %v2497_v39 = vpop.eup %2496 }
 0x3f3   :  { %v367_v40 = vsel %vm247_vm3, %v2497_v39, 0.0  ;;  %v598_v46 = vmul.f32 1.442695, %v597_v45 }
 0x3f4   :  { %368 = vadd.xlane.f32.xlu1 %v367_v40 }
 0x3f5   :  { %2500 = vpow2.f32 %v598_v46 }
 0x3fa   :  { %v2499_v41 = vpop.eup %2498 }
 0x3fb   :  { %v488_v43 = vsel %vm247_vm3, %v2499_v41, 0.0 }
 0x3fc   :  { %489 = vadd.xlane.f32.xlu0 %v488_v43 }
 0x402   :  { %v2501_v47 = vpop.eup %2500 }
 0x403   :  { %v600_v48 = vsel %vm247_vm3, %v2501_v47, 0.0 }
 0x405   :  { %373 = vrot.lane.b32.xlu1 %v2754_v38, %s2591_s25 }
 0x409   :  { %494 = vrot.lane.b32.xlu1 %v2760_v42, %s2592_s26 }
 0x412   :  { %260 = vrot.lane.b32.xlu0 %v2754_v38, %s2592_s26 }
 0x42d   :  { %601 = vadd.xlane.f32.xlu1 %v600_v48 }
 0x43e   :  { %606 = vrot.lane.b32.xlu1 %v2760_v42, %s2591_s25 }
 0x475   :  { %v256_v49 = vpop.xlane.xlu0 %255 }
 0x476   :  { %2502 = vrcp.f32 %v256_v49 }
 0x47d   :  { %v369_v50 = vpop.xlane.xlu1 %368 }
 0x47e   :  { %2504 = vrcp.f32 %v369_v50 }
 0x481   :  { %v374_v56 = vpop.permute.xlu1 %373 }
 0x482   :  { %v379_v42 = vsel %vm265_vm4, %v374_v56, 0 }
 0x483   :  { %v2503_v51 = vpop.eup %2502 }
 0x484   :  { %v258_v54 = vmul.f32 %v2503_v51, %v2495_v35 }
 0x485   :  { %v490_v52 = vpop.xlane.xlu0 %489  ;;  %v495_v61 = vpop.permute.xlu1 %494 }
 0x486   :  { %2506 = vrcp.f32 %v490_v52  ;;  %v259_v58 = vpack.c.bf16 %v258_v54, %v258_v54  ;;  %v500_v0 = vsel %vm265_vm4, %v495_v61, 0 }
 0x489   :  { %v261_v38 = vpop.permute.xlu0 %260 }
 0x48a   :  { %v267_v55 = vsel %vm265_vm4, %v261_v38, 0 }
 0x48b   :  { %2266 = vmatpush3.bf16.msra.mxu0 %v267_v55  ;;  %v2505_v59 = vpop.eup %2504 }
 0x48c   :  { %2277 = vmatprep.subr.bf16.mxu0 %v2586_v15  ;;  %v371_v60 = vmul.f32 %v2505_v59, %v2497_v39  ;;  %v2097_v39 = vld [vmem:[%s3139_s8] ss:$0 sm:$0xff] }
 0x48e   :  { %2268 = vmatmul.mubr.msk.bf16.vlgmr.msra.gmra.mxu0 %vm247_vm3, %v259_v58  ;;  %v372_v62 = vpack.c.bf16 %v371_v60, %v371_v60  ;;  %v2469_v60 = vld [vmem:[%s3142_s11] sm:$0xff]  }
 0x48f   :  { %2278 = vmatpush3.bf16.msra.mxu0 %v379_v42  ;;  %2279 = vmatprep.mubr.msk.bf16.mxu0 %vm2587_vm1, %v2586_v15 }
 0x490   :  { %2289 = vmatprep.subr.bf16.mxu0 %v2586_v15 }
 0x493   :  { %v2507_v63 = vpop.eup %2506 }
 0x494   :  { %v492_v1 = vmul.f32 %v2507_v63, %v2499_v41 }
 0x496   :  { %2280 = vmatmul.mubr.msk.bf16.vlgmr.msra.gmra.mxu0 %vm247_vm3, %v372_v62  ;;  %v493_v2 = vpack.c.bf16 %v492_v1, %v492_v1 }
 0x497   :  { %2290 = vmatpush3.bf16.msra.mxu0 %v500_v0  ;;  %2291 = vmatprep.mubr.msk.bf16.mxu0 %vm2587_vm1, %v2586_v15 }
 0x498   :  { %2301 = vmatprep.subr.bf16.mxu0 %v2586_v15 }
 0x49e   :  { %2292 = vmatmul.mubr.msk.bf16.vlgmr.msra.gmra.mxu0 %vm247_vm3, %v493_v2 }
 0x49f   :  { %2303 = vmatprep.mubr.msk.bf16.mxu0 %vm2587_vm1, %v2586_v15 }
 0x4b6   :  { %v602_v3 = vpop.xlane.xlu1 %601 }
 0x4b7   :  { %2508 = vrcp.f32 %v602_v3 }
 0x4ba   :  { %v607_v4 = vpop.permute.xlu1 %606 }
 0x4bb   :  { %v612_v5 = vsel %vm265_vm4, %v607_v4, 0 }
 0x4bc   :  { %2302 = vmatpush3.bf16.msra.mxu0 %v612_v5  ;;  %v2101_v5 = vld [vmem:[%s3140_s9] ss:$0 sm:$0xff] }
 0x4bd   :  { %2315 = vmatprep.subr.bf16.mxu0 %v2586_v15 }
 0x4c4   :  { %v2509_v6 = vpop.eup %2508 }
 0x4c5   :  { %v604_v7 = vmul.f32 %v2509_v6, %v2501_v47 }
 0x4c7   :  { %v605_v8 = vpack.c.bf16 %v604_v7, %v604_v7 }
 0x4c9   :  { %2304 = vmatmul.mubr.msk.bf16.vlgmr.msra.gmra.mxu0 %vm247_vm3, %v605_v8 }
 0x4ca   :  { %2319 = vmatprep.mubr.msk.bf16.mxu0 %vm2587_vm1, %v2586_v15 }
 0x54e   :  { %v303_v11 = vpop.f32.mrf.mxu0 }
 0x550   :  { %v2269_v12 = vpop.f32.mrf.mxu0 }
 0x552   :  { %v306_v13 = vpop.f32.mrf.mxu0 }
 0x554   :  { %v2270_v14 = vpop.f32.mrf.mxu0 }
 0x556   :  { %v415_v16 = vpop.f32.mrf.mxu0 }
 0x558   :  { %v2281_v17 = vpop.f32.mrf.mxu0 }
 0x559   :  { %v2471_v17 = vld [vmem:[%s3144_s13 + $0x10] sm:$0xff]  }
 0x55a   :  { %v418_v18 = vpop.f32.mrf.mxu0 }
 0x55b   :  { %v2472_v18 = vld [vmem:[%s3144_s13 + $0x8] sm:$0xff]  }
 0x55c   :  { %v2282_v19 = vpop.f32.mrf.mxu0 }
 0x55d   :  { %v2473_v19 = vld [vmem:[%s3144_s13] sm:$0xff]  }
 0x55e   :  { %v536_v20 = vpop.f32.mrf.mxu0 }
 0x560   :  { %v2293_v21 = vpop.f32.mrf.mxu0 }
 0x562   :  { %v539_v22 = vpop.f32.mrf.mxu0 }
 0x564   :  { %v2294_v23 = vpop.f32.mrf.mxu0 }
 0x589   :  { %v648_v25 = vpop.f32.mrf.mxu0 }
 0x58a   :  { %v2452_v26 = vpack.i.bf16 %v648_v25, %v415_v16  ;;  %v2470_v16 = vld [vmem:[%s3144_s13 + $0x18] sm:$0xff]  }
 0x58b   :  { %v2305_v27 = vpop.f32.mrf.mxu0 }
 0x58c   :  { %2453 = vrot.lane.b32.xlu0 %v2452_v26, %s3157_s29 }
 0x58d   :  { %v651_v28 = vpop.f32.mrf.mxu0 }
 0x58f   :  { %v2306_v29 = vpop.f32.mrf.mxu0 }
 0x5fe   :  { %v2454_v30 = vpop.permute.xlu0 %2453 }
 0x5ff   :  { %v2456_v33 = vunpack.i.h.bf16 %v2454_v30  ;;  %v2455_v34 = vunpack.i.l.bf16 %v2454_v30 }
 0x601   :  { %v658_v35 = vsel %vm194_vm2, %v536_v20, %v2456_v33  ;;  %v425_v36 = vsel %vm194_vm2, %v303_v11, %v2455_v34  ;;  %v2103_v20 = vld [vmem:[%s3143_s12] ss:$0 sm:$0xff] }
 0x602   :  { %v663_v37 = vpack.c.bf16 %v658_v35, %v425_v36 }
 0x604   :  { %2312 = vmatmul.mubr.msk.bf16.vlgmr.msra.gmra.mxu1 %vm77_vm0, %v663_v37 }
 0x605   :  { %2331 = vmatprep.mubr.msk.bf16.mxu1 %vm2587_vm1, %v2586_v15  ;;  %2324 = vmatpush3.bf16.msra.mxu1 %v2470_v16 }
 0x606   :  { %2325 = vmatprep.subr.bf16.mxu1 %v2586_v15 }
 0x609   :  { %2326 = vmatpush3.bf16.msra.mxu1 %v2471_v17  ;;  %v2113_v17 = vld [vmem:[%s3146_s15] ss:$0 sm:$0xff] }
 0x60a   :  { %2327 = vmatprep.subr.bf16.mxu1 %v2586_v15 }
 0x60d   :  { %2328 = vmatpush3.bf16.msra.mxu1 %v2472_v18 }
 0x60e   :  { %2329 = vmatprep.subr.bf16.mxu1 %v2586_v15 }
 0x611   :  { %2330 = vmatpush3.bf16.msra.mxu1 %v2473_v19 }
 0x612   :  { %2349 = vmatprep.subr.bf16.mxu1 %v2586_v15 }
 0x6c4   :  { %v720_v40 = vpop.f32.mrf.mxu1 }
 0x6c5   :  { %v721_v41 = vadd.f32 %v2097_v39, %v720_v40 }
 0x6c6   :  { %v2313_v43 = vpop.f32.mrf.mxu1 }
 0x6c7   :  { %v727_v44 = vadd.f32 %v721_v41, %v2742_v31 }
 0x6c8   :  { %v723_v45 = vpop.f32.mrf.mxu1 }
 0x6c9   :  { %v724_v46 = vadd.f32 %v2097_v39, %v723_v45  ;;  %v731_v47 = vsel %vm77_vm0, %v727_v44, 0.0 }
 0x6ca   :  { %732 = vadd.xlane.f32.xlu1 %v731_v47  ;;  %v2314_v48 = vpop.f32.mrf.mxu1 }
 0x6cb   :  { %v728_v49 = vadd.f32 %v724_v46, %v2744_v32  ;;  %v2468_v32 = vld [vmem:[%s3142_s11 + $0x8] sm:$0xff]  }
 0x6cc   :  { %2316 = vmatpush3.bf16.msra.mxu0 %v2468_v32 }
 0x6cd   :  { %v734_v50 = vsel %vm77_vm0, %v728_v49, 0.0  ;;  %2317 = vmatprep.subr.bf16.mxu0 %v2586_v15 }
 0x6ce   :  { %735 = vadd.xlane.f32.xlu0 %v734_v50  ;;  %v2107_v50 = vld [vmem:[%s3145_s14] ss:$0 sm:$0xff] }
 0x6d0   :  { %2318 = vmatpush3.bf16.msra.mxu0 %v2469_v60 }
 0x6d1   :  { %2335 = vmatprep.subr.bf16.mxu0 %v2586_v15 }
 0x753   :  { %v733_v51 = vpop.xlane.xlu1 %732 }
 0x754   :  { %v737_v52 = vmul.f32 0.03125, %v733_v51 }
 0x756   :  { %v739_v54 = vsub.f32 %v727_v44, %v737_v52 }
 0x757   :  { %v736_v38 = vpop.xlane.xlu0 %735 }
 0x758   :  { %v738_v55 = vmul.f32 0.03125, %v736_v38  ;;  %v741_v56 = vmul.f32 %v739_v54, %v739_v54 }
 0x75a   :  { %v740_v58 = vsub.f32 %v728_v49, %v738_v55  ;;  %v743_v31 = vsel %vm77_vm0, %v741_v56, 0.0 }
 0x75b   :  { %744 = vadd.xlane.f32.xlu0 %v743_v31 }
 0x75c   :  { %v742_v59 = vmul.f32 %v740_v58, %v740_v58 }
 0x75e   :  { %v746_v42 = vsel %vm77_vm0, %v742_v59, 0.0 }
 0x75f   :  { %747 = vadd.xlane.f32.xlu0 %v746_v42 }
 0x7e4   :  { %v745_v61 = vpop.xlane.xlu0 %744 }
 0x7e5   :  { %v749_v62 = vmul.f32 0.03125, %v745_v61 }
 0x7e7   :  { %v751_v63 = vadd.f32 1e-12, %v749_v62 }
 0x7e8   :  { %v748_v0 = vpop.xlane.xlu0 %747 }
 0x7e9   :  { %2510 = vrsqrt.f32 %v751_v63  ;;  %v750_v1 = vmul.f32 0.03125, %v748_v0 }
 0x7eb   :  { %v752_v2 = vadd.f32 1e-12, %v750_v1 }
 0x7ed   :  { %2512 = vrsqrt.f32 %v752_v2 }
 0x7f6   :  { %v2511_v3 = vpop.eup %2510 }
 0x7f7   :  { %v755_v4 = vmul.f32 %v2511_v3, %v739_v54 }
 0x7f9   :  { %v763_v8 = vmul.f32 %v2101_v5, %v755_v4 }
 0x7fa   :  { %v2513_v6 = vpop.eup %2512 }
 0x7fb   :  { %v756_v7 = vmul.f32 %v2513_v6, %v740_v58  ;;  %v771_v12 = vadd.f32 %v2102_v10, %v763_v8  ;;  %v2475_v6 = vld [vmem:[%s3166_s1 + $0x10] sm:$0xff]  }
 0x7fd   :  { %v764_v11 = vmul.f32 %v2101_v5, %v756_v7  ;;  %v2474_v5 = vld [vmem:[%s3166_s1 + $0x18] sm:$0xff]  }
 0x7ff   :  { %v772_v13 = vadd.f32 %v2102_v10, %v764_v11 }
 0x801   :  { %v777_v14 = vpack.c.bf16 %v772_v13, %v771_v12 }
 0x803   :  { %2320 = vmatmul.mubr.msk.bf16.vlgmr.msra.gmra.mxu0 %vm77_vm0, %v777_v14 }
 0x804   :  { %2339 = vmatprep.mubr.msk.bf16.mxu0 %vm2587_vm1, %v2586_v15  ;;  %2336 = vmatpush3.bf16.msra.mxu0 %v2474_v5 }
 0x805   :  { %2337 = vmatprep.subr.bf16.mxu0 %v2586_v15 }
 0x808   :  { %2338 = vmatpush3.bf16.msra.mxu0 %v2475_v6 }
 0x809   :  { %2343 = vmatprep.subr.bf16.mxu0 %v2586_v15 }
 0x8c3   :  { %v834_v21 = vpop.f32.mrf.mxu0 }
 0x8c4   :  { %v835_v22 = vadd.f32 %v2103_v20, %v834_v21  ;;  %v2114_v21 = vld [vmem:[%s3147_s16] ss:$0 sm:$0xff] }
 0x8c5   :  { %v2321_v23 = vpop.f32.mrf.mxu0 }
 0x8c6   :  { %v843_v24 = vmul.f32 0.044715, %v835_v22  ;;  %v841_v44 = vmul.f32 0.5, %v835_v22 }
 0x8c7   :  { %v837_v25 = vpop.f32.mrf.mxu0 }
 0x8c8   :  { %v845_v26 = vmul.f32 %v843_v24, %v835_v22  ;;  %v838_v27 = vadd.f32 %v2103_v20, %v837_v25 }
 0x8c9   :  { %v2322_v28 = vpop.f32.mrf.mxu0 }
 0x8ca   :  { %v847_v29 = vmul.f32 %v845_v26, %v835_v22  ;;  %v844_v30 = vmul.f32 0.044715, %v838_v27  ;;  %v842_v45 = vmul.f32 0.5, %v838_v27  ;;  %v2120_v26 = vld [vmem:[%s3169_s30 + $0x1] ss:$0 sm:$0xff] }
 0x8cc   :  { %v849_v33 = vadd.f32 %v847_v29, %v835_v22  ;;  %v846_v34 = vmul.f32 %v844_v30, %v838_v27 }
 0x8ce   :  { %v851_v35 = vmul.f32 0.7978846, %v849_v33  ;;  %v848_v36 = vmul.f32 %v846_v34, %v838_v27 }
 0x8d0   :  { %2514 = vtanh.f32 %v851_v35  ;;  %v850_v37 = vadd.f32 %v848_v36, %v838_v27 }
 0x8d2   :  { %v852_v39 = vmul.f32 0.7978846, %v850_v37 }
 0x8d4   :  { %2516 = vtanh.f32 %v852_v39 }
 0x8dd   :  { %v2515_v40 = vpop.eup %2514 }
 0x8de   :  { %v855_v41 = vadd.f32 1.0, %v2515_v40 }
 0x8e0   :  { %v857_v47 = vmul.f32 %v855_v41, %v841_v44 }
 0x8e1   :  { %v2517_v43 = vpop.eup %2516 }
 0x8e2   :  { %v856_v46 = vadd.f32 1.0, %v2517_v43 }
 0x8e4   :  { %v858_v48 = vmul.f32 %v856_v46, %v842_v45 }
 0x8e6   :  { %v867_v49 = vpack.c.bf16 %v858_v48, %v857_v47 }
 0x8e8   :  { %2332 = vmatmul.mubr.msk.bf16.vlgmr.msra.gmra.mxu1 %vm899_vm5, %v867_v49 }
 0x8e9   :  { %2351 = vmatprep.mubr.msk.bf16.mxu1 %vm2587_vm1, %v2586_v15 }
 0x9a8   :  { %v937_v51 = vpop.f32.mrf.mxu1 }
 0x9a9   :  { %v938_v52 = vadd.f32 %v2107_v50, %v937_v51 }
 0x9aa   :  { %v2333_v54 = vpop.f32.mrf.mxu1 }
 0x9ab   :  { %v944_v38 = vadd.f32 %v938_v52, %v771_v12 }
 0x9ac   :  { %v940_v55 = vpop.f32.mrf.mxu1 }
 0x9ad   :  { %v941_v56 = vadd.f32 %v2107_v50, %v940_v55  ;;  %v948_v58 = vsel %vm77_vm0, %v944_v38, 0.0 }
 0x9ae   :  { %949 = vadd.xlane.f32.xlu1 %v948_v58  ;;  %v2334_v31 = vpop.f32.mrf.mxu1 }
 0x9af   :  { %v945_v59 = vadd.f32 %v941_v56, %v772_v13 }
 0x9b1   :  { %v951_v42 = vsel %vm77_vm0, %v945_v59, 0.0 }
 0x9b2   :  { %952 = vadd.xlane.f32.xlu0 %v951_v42 }
 0xa37   :  { %v950_v32 = vpop.xlane.xlu1 %949 }
 0xa38   :  { %v954_v60 = vmul.f32 0.03125, %v950_v32 }
 0xa3a   :  { %v956_v61 = vsub.f32 %v944_v38, %v954_v60 }
 0xa3b   :  { %v953_v62 = vpop.xlane.xlu0 %952 }
 0xa3c   :  { %v955_v63 = vmul.f32 0.03125, %v953_v62  ;;  %v958_v0 = vmul.f32 %v956_v61, %v956_v61 }
 0xa3e   :  { %v957_v1 = vsub.f32 %v945_v59, %v955_v63  ;;  %v960_v2 = vsel %vm77_vm0, %v958_v0, 0.0 }
 0xa3f   :  { %961 = vadd.xlane.f32.xlu1 %v960_v2 }
 0xa40   :  { %v959_v3 = vmul.f32 %v957_v1, %v957_v1 }
 0xa42   :  { %v963_v4 = vsel %vm77_vm0, %v959_v3, 0.0 }
 0xa43   :  { %964 = vadd.xlane.f32.xlu0 %v963_v4 }
 0xac8   :  { %v962_v7 = vpop.xlane.xlu1 %961 }
 0xac9   :  { %v966_v8 = vmul.f32 0.03125, %v962_v7 }
 0xacb   :  { %v968_v10 = vadd.f32 1e-12, %v966_v8 }
 0xacc   :  { %v965_v11 = vpop.xlane.xlu0 %964 }
 0xacd   :  { %2518 = vrsqrt.f32 %v968_v10  ;;  %v967_v12 = vmul.f32 0.03125, %v965_v11 }
 0xacf   :  { %v969_v13 = vadd.f32 1e-12, %v967_v12 }
 0xad1   :  { %2520 = vrsqrt.f32 %v969_v13 }
 0xada   :  { %v2519_v14 = vpop.eup %2518 }
 0xadb   :  { %v972_v16 = vmul.f32 %v2519_v14, %v956_v61 }
 0xadd   :  { %v980_v20 = vmul.f32 %v2113_v17, %v972_v16 }
 0xade   :  { %v2521_v18 = vpop.eup %2520 }
 0xadf   :  { %v973_v19 = vmul.f32 %v2521_v18, %v957_v1  ;;  %v2923_v23 = vadd.f32 %v2114_v21, %v980_v20 }
 0xae1   :  { %v981_v22 = vmul.f32 %v2113_v17, %v973_v19 }
 0xae3   :  { %v2925_v24 = vadd.f32 %v2114_v21, %v981_v22 }
 0xae5   :  { %v995_v25 = vpack.c.bf16 %v2925_v24, %v2923_v23 }
 0xae7   :  { %2340 = vmatmul.mubr.msk.bf16.vlgmr.msra.gmra.mxu0 %vm77_vm0, %v995_v25 }
 0xae8   :  { %2345 = vmatprep.mubr.msk.bf16.mxu0 %vm2587_vm1, %v2586_v15 }
 0xba7   :  { %v1053_v27 = vpop.f32.mrf.mxu0 }
 0xba8   :  { %v1054_v28 = vadd.f32 %v2120_v26, %v1053_v27 }
 0xba9   :  { %v2341_v29 = vpop.f32.mrf.mxu0 }
 0xbaa   :  { %v2935_v30 = vpack.c.bf16 %v1054_v28, %v1054_v28 }
 0xbab   :  { %v1056_v33 = vpop.f32.mrf.mxu0 }
 0xbac   :  { %v1057_v34 = vadd.f32 %v2120_v26, %v1056_v33  ;;  %1174 = vrot.lane.b32.xlu0 %v2935_v30, %s2588_s4  ;;  %1062 = vrot.lane.b32.xlu1 %v2935_v30, %s2589_s0 }
 0xbad   :  { %v2342_v35 = vpop.f32.mrf.mxu0 }
 0xbae   :  { %v2941_v36 = vpack.c.bf16 %v1057_v34, %v1057_v34 }
 0xbb0   :  { %1172 = vrot.lane.b32.xlu1 %v2935_v30, %s2590_s23  ;;  %1401 = vrot.lane.b32.xlu0 %v2941_v36, %s2590_s23 }
 0xbb4   :  { %1291 = vrot.lane.b32.xlu1 %v2941_v36, %s2589_s0 }
 0xbb8   :  { %1403 = vrot.lane.b32.xlu1 %v2941_v36, %s2588_s4 }
 0xc1e   :  { %v1063_v37 = vpop.permute.xlu1 %1062  ;;  %v1175_v40 = vpop.permute.xlu0 %1174 }
 0xc1f   :  { %v1068_v39 = vsel %vm194_vm2, %v1063_v37, 0  ;;  %v1180_v43 = vsel %vm194_vm2, %v1175_v40, 0 }
 0xc20   :  { %2344 = vmatpush3.bf16.xpose.msra.mxu0 %v1068_v39 }
 0xc21   :  { %2355 = vmatprep.subr.bf16.mxu0 %v2586_v15 }
 0xc22   :  { %v1173_v41 = vpop.permute.xlu1 %1172  ;;  %v1402_v48 = vpop.permute.xlu0 %1401 }
 0xc26   :  { %v1292_v44 = vpop.permute.xlu1 %1291 }
 0xc27   :  { %2346 = vmatmul.mubr.msk.bf16.vlgmr.msra.gmra.mxu0 %vm194_vm2, %v2935_v30  ;;  %v1297_v45 = vsel %vm194_vm2, %v1292_v44, 0 }
 0xc28   :  { %2356 = vmatpush3.bf16.xpose.msra.mxu0 %v1180_v43  ;;  %2357 = vmatprep.mubr.msk.bf16.mxu0 %vm2587_vm1, %v2586_v15 }
 0xc29   :  { %2367 = vmatprep.subr.bf16.mxu0 %v2586_v15 }
 0xc2a   :  { %v1404_v46 = vpop.permute.xlu1 %1403 }
 0xc2b   :  { %v1409_v47 = vsel %vm194_vm2, %v1404_v46, 0 }
 0xc2f   :  { %2358 = vmatmul.mubr.msk.bf16.vlgmr.msra.gmra.mxu0 %vm194_vm2, %v1173_v41 }
 0xc30   :  { %2368 = vmatpush3.bf16.xpose.msra.mxu0 %v1297_v45  ;;  %2369 = vmatprep.mubr.msk.bf16.mxu0 %vm2587_vm1, %v2586_v15 }
 0xc31   :  { %2379 = vmatprep.subr.bf16.mxu0 %v2586_v15 }
 0xc37   :  { %2370 = vmatmul.mubr.msk.bf16.vlgmr.msra.gmra.mxu0 %vm194_vm2, %v2941_v36 }
 0xc38   :  { %2380 = vmatpush3.bf16.xpose.msra.mxu0 %v1409_v47  ;;  %2381 = vmatprep.mubr.msk.bf16.mxu0 %vm2587_vm1, %v2586_v15 }
 0xc39   :  { %2391 = vmatprep.subr.bf16.mxu0 %v2586_v15 }
 0xc3f   :  { %2382 = vmatmul.mubr.msk.bf16.vlgmr.msra.gmra.mxu0 %vm194_vm2, %v1402_v48 }
 0xc40   :  { %2395 = vmatprep.mubr.msk.bf16.mxu0 %vm2587_vm1, %v2586_v15 }
 0xce7   :  { %v1104_v49 = vpop.f32.mrf.mxu0 }
 0xce8   :  { %v1110_v50 = vmul.f32 0.25, %v1104_v49 }
 0xce9   :  { %v2347_v51 = vpop.f32.mrf.mxu0 }
 0xcea   :  { %v1111_v52 = vadd.f32 %v1110_v50, %v2796_v57 }
 0xceb   :  { %v1107_v54 = vpop.f32.mrf.mxu0 }
 0xcec   :  { %v1112_v38 = vsel %vm247_vm3, %v1111_v52, -inf }
 0xced   :  { %1113 = vmax.xlane.f32.xlu1 %v1112_v38  ;;  %v2348_v55 = vpop.f32.mrf.mxu0 }
 0xcef   :  { %v1216_v56 = vpop.f32.mrf.mxu0 }
 0xcf0   :  { %v1222_v58 = vmul.f32 0.25, %v1216_v56 }
 0xcf1   :  { %v2359_v31 = vpop.f32.mrf.mxu0 }
 0xcf2   :  { %v1223_v59 = vadd.f32 %v1222_v58, %v2796_v57 }
 0xcf3   :  { %v1219_v42 = vpop.f32.mrf.mxu0 }
 0xcf4   :  { %v1224_v32 = vsel %vm247_vm3, %v1223_v59, -inf }
 0xcf5   :  { %1225 = vmax.xlane.f32.xlu0 %v1224_v32  ;;  %v2360_v60 = vpop.f32.mrf.mxu0  ;;  %v2476_v32 = vld [vmem:[%s3138_s7 + $0x18] sm:$0xff]  }
 0xcf6   :  { %2392 = vmatpush3.bf16.msra.mxu0 %v2476_v32 }
 0xcf7   :  { %v1333_v61 = vpop.f32.mrf.mxu0  ;;  %2393 = vmatprep.subr.bf16.mxu0 %v2586_v15 }
 0xcf8   :  { %v1339_v62 = vmul.f32 0.25, %v1333_v61 }
 0xcf9   :  { %v2371_v63 = vpop.f32.mrf.mxu0 }
 0xcfa   :  { %v1340_v0 = vadd.f32 %v1339_v62, %v2802_v9 }
 0xcfb   :  { %v1336_v1 = vpop.f32.mrf.mxu0 }
 0xcfc   :  { %v1341_v2 = vsel %vm247_vm3, %v1340_v0, -inf }
 0xcfd   :  { %1342 = vmax.xlane.f32.xlu0 %v1341_v2  ;;  %v2372_v3 = vpop.f32.mrf.mxu0 }
 0xcff   :  { %v1445_v4 = vpop.f32.mrf.mxu0 }
 0xd00   :  { %v1451_v5 = vmul.f32 0.25, %v1445_v4  ;;  %v2477_v4 = vld [vmem:[%s3138_s7 + $0x10] sm:$0xff]  }
 0xd01   :  { %v2383_v6 = vpop.f32.mrf.mxu0  ;;  %2394 = vmatpush3.bf16.msra.mxu0 %v2477_v4 }
 0xd02   :  { %v1452_v57 = vadd.f32 %v1451_v5, %v2802_v9  ;;  %2407 = vmatprep.subr.bf16.mxu0 %v2586_v15 }
 0xd03   :  { %v1448_v7 = vpop.f32.mrf.mxu0 }
 0xd04   :  { %v1453_v8 = vsel %vm247_vm3, %v1452_v57, -inf }
 0xd05   :  { %1454 = vmax.xlane.f32.xlu0 %v1453_v8  ;;  %v2384_v10 = vpop.f32.mrf.mxu0 }
 0xd76   :  { %v1114_v11 = vpop.xlane.xlu1 %1113 }
 0xd77   :  { %v1115_v12 = vsub.f32 %v1111_v52, %v1114_v11 }
 0xd79   :  { %v1116_v13 = vmul.f32 1.442695, %v1115_v12 }
 0xd7b   :  { %2522 = vpow2.f32 %v1116_v13 }
 0xd7e   :  { %v1226_v14 = vpop.xlane.xlu0 %1225 }
 0xd7f   :  { %v1227_v16 = vsub.f32 %v1223_v59, %v1226_v14 }
 0xd81   :  { %v1228_v17 = vmul.f32 1.442695, %v1227_v16 }
 0xd83   :  { %2524 = vpow2.f32 %v1228_v17 }
 0xd86   :  { %v1343_v20 = vpop.xlane.xlu0 %1342 }
 0xd87   :  { %v1344_v29 = vsub.f32 %v1340_v0, %v1343_v20 }
 0xd88   :  { %v2523_v18 = vpop.eup %2522 }
 0xd89   :  { %v1118_v19 = vsel %vm247_vm3, %v2523_v18, 0.0  ;;  %v1345_v33 = vmul.f32 1.442695, %v1344_v29 }
 0xd8a   :  { %1119 = vadd.xlane.f32.xlu1 %v1118_v19 }
 0xd8e   :  { %v1455_v21 = vpop.xlane.xlu0 %1454 }
 0xd8f   :  { %v1456_v9 = vsub.f32 %v1452_v57, %v1455_v21  ;;  %v2137_v21 = vld [vmem:[%s3139_s8 + $0x1] ss:$0 sm:$0xff] }
 0xd90   :  { %v2525_v22 = vpop.eup %2524 }
 0xd91   :  { %v1457_v25 = vmul.f32 1.442695, %v1456_v9  ;;  %v1230_v26 = vsel %vm247_vm3, %v2525_v22, 0.0 }
 0xd92   :  { %1231 = vadd.xlane.f32.xlu0 %v1230_v26 }
 0xd93   :  { %2526 = vpow2.f32 %v1457_v25 }
 0xd94   :  { %2528 = vpow2.f32 %v1345_v33 }
 0xd9b   :  { %1124 = vrot.lane.b32.xlu1 %v2935_v30, %s2592_s26 }
 0xda0   :  { %v2527_v27 = vpop.eup %2526 }
 0xda1   :  { %v1459_v28 = vsel %vm247_vm3, %v2527_v27, 0.0  ;;  %v2529_v34 = vpop.eup %2528 }
 0xda2   :  { %1460 = vadd.xlane.f32.xlu0 %v1459_v28  ;;  %v1347_v35 = vsel %vm247_vm3, %v2529_v34, 0.0 }
 0xdb8   :  { %1236 = vrot.lane.b32.xlu0 %v2935_v30, %s2591_s25 }
 0xdbf   :  { %1348 = vadd.xlane.f32.xlu1 %v1347_v35 }
 0xdd0   :  { %1353 = vrot.lane.b32.xlu1 %v2941_v36, %s2592_s26 }
 0xdd4   :  { %1465 = vrot.lane.b32.xlu1 %v2941_v36, %s2591_s25  ;;  %s3171_s25 = smov 16  }
 0xe13   :  { %v1120_v37 = vpop.xlane.xlu1 %1119 }
 0xe14   :  { %2530 = vrcp.f32 %v1120_v37 }
 0xe17   :  { %v1125_v39 = vpop.permute.xlu1 %1124 }
 0xe18   :  { %v1130_v40 = vsel %vm265_vm4, %v1125_v39, 0 }
 0xe19   :  { %2350 = vmatpush3.bf16.msra.mxu1 %v1130_v40 }
 0xe1a   :  { %2361 = vmatprep.subr.bf16.mxu1 %v2586_v15 }
 0xe1b   :  { %v1232_v41 = vpop.xlane.xlu0 %1231 }
 0xe1c   :  { %2532 = vrcp.f32 %v1232_v41 }
 0xe21   :  { %v2531_v30 = vpop.eup %2530 }
 0xe22   :  { %v1122_v43 = vmul.f32 %v2531_v30, %v2523_v18 }
 0xe24   :  { %v1123_v44 = vpack.c.bf16 %v1122_v43, %v1122_v43 }
 0xe26   :  { %2352 = vmatmul.mubr.msk.bf16.vlgmr.msra.gmra.mxu1 %vm247_vm3, %v1123_v44 }
 0xe27   :  { %2363 = vmatprep.mubr.msk.bf16.mxu1 %vm2587_vm1, %v2586_v15 }
 0xe29   :  { %v2533_v45 = vpop.eup %2532 }
 0xe2a   :  { %v1234_v46 = vmul.f32 %v2533_v45, %v2525_v22 }
 0xe2b   :  { %v1461_v36 = vpop.xlane.xlu0 %1460 }
 0xe2c   :  { %v1235_v49 = vpack.c.bf16 %v1234_v46, %v1234_v46  ;;  %v2479_v46 = vld [vmem:[%s3142_s11 + $0x10] sm:$0xff]  }
 0xe2f   :  { %v1237_v47 = vpop.permute.xlu0 %1236 }
 0xe30   :  { %v1242_v48 = vsel %vm265_vm4, %v1237_v47, 0 }
 0xe31   :  { %2362 = vmatpush3.bf16.msra.mxu1 %v1242_v48 }
 0xe32   :  { %2373 = vmatprep.subr.bf16.mxu1 %v2586_v15 }
 0xe34   :  { %2364 = vmatmul.mubr.msk.bf16.vlgmr.msra.gmra.mxu1 %vm247_vm3, %v1235_v49 }
 0xe35   :  { %2375 = vmatprep.mubr.msk.bf16.mxu1 %vm2587_vm1, %v2586_v15 }
 0xe48   :  { %v1349_v50 = vpop.xlane.xlu1 %1348 }
 0xe49   :  { %2534 = vrcp.f32 %v1349_v50 }
 0xe4a   :  { %2536 = vrcp.f32 %v1461_v36 }
 0xe4c   :  { %v1354_v51 = vpop.permute.xlu1 %1353 }
 0xe4d   :  { %v1359_v52 = vsel %vm265_vm4, %v1354_v51, 0 }
 0xe4e   :  { %2374 = vmatpush3.bf16.msra.mxu1 %v1359_v52 }
 0xe4f   :  { %2385 = vmatprep.subr.bf16.mxu1 %v2586_v15 }
 0xe50   :  { %v1466_v55 = vpop.permute.xlu1 %1465 }
 0xe51   :  { %v1471_v31 = vsel %vm265_vm4, %v1466_v55, 0  ;;  %v2143_v55 = vld [vmem:[%s3140_s9 + $0x1] ss:$0 sm:$0xff] }
 0xe56   :  { %v2535_v54 = vpop.eup %2534 }
 0xe57   :  { %v1351_v38 = vmul.f32 %v2535_v54, %v2529_v34  ;;  %v2537_v58 = vpop.eup %2536 }
 0xe58   :  { %v1463_v59 = vmul.f32 %v2537_v58, %v2527_v27 }
 0xe59   :  { %v1352_v56 = vpack.c.bf16 %v1351_v38, %v1351_v38 }
 0xe5a   :  { %v1464_v42 = vpack.c.bf16 %v1463_v59, %v1463_v59  ;;  %v2144_v59 = vld [vmem:[%s3141_s10 + $0x1] ss:$0 sm:$0xff]  ;;  %s3172_s10 = sld [smem:[#allocation10_spill]] }
 0xe5b   :  { %2376 = vmatmul.mubr.msk.bf16.vlgmr.msra.gmra.mxu1 %vm247_vm3, %v1352_v56 }
 0xe5c   :  { %2386 = vmatpush3.bf16.msra.mxu1 %v1471_v31  ;;  %2387 = vmatprep.mubr.msk.bf16.mxu1 %vm2587_vm1, %v2586_v15 }
 0xe5d   :  { %2399 = vmatprep.subr.bf16.mxu1 %v2586_v15 }
 0xe63   :  { %2388 = vmatmul.mubr.msk.bf16.vlgmr.msra.gmra.mxu1 %vm247_vm3, %v1464_v42 }
 0xe64   :  { %2403 = vmatprep.mubr.msk.bf16.mxu1 %vm2587_vm1, %v2586_v15 }
 0xee6   :  { %v1166_v60 = vpop.f32.mrf.mxu1 }
 0xee8   :  { %v2353_v61 = vpop.f32.mrf.mxu1 }
 0xeea   :  { %v1169_v62 = vpop.f32.mrf.mxu1 }
 0xeeb   :  { %v2480_v62 = vld [vmem:[%s3144_s13 + $0x38] sm:$0xff]  }
 0xeec   :  { %v2354_v63 = vpop.f32.mrf.mxu1 }
 0xeed   :  { %v2481_v63 = vld [vmem:[%s3144_s13 + $0x30] sm:$0xff]  }
 0xef4   :  { %v1278_v0 = vpop.f32.mrf.mxu1 }
 0xef6   :  { %v2365_v1 = vpop.f32.mrf.mxu1 }
 0xef7   :  { %v2483_v1 = vld [vmem:[%s3144_s13 + $0x20] sm:$0xff]  }
 0xef8   :  { %v1281_v2 = vpop.f32.mrf.mxu1 }
 0xef9   :  { %v2150_v2 = vld [vmem:[%s3143_s12 + $0x1] ss:$0 sm:$0xff] }
 0xefa   :  { %v2366_v3 = vpop.f32.mrf.mxu1 }
 0xf1b   :  { %v1395_v5 = vpop.f32.mrf.mxu1 }
 0xf1d   :  { %v2377_v6 = vpop.f32.mrf.mxu1 }
 0xf1f   :  { %v1398_v57 = vpop.f32.mrf.mxu1 }
 0xf21   :  { %v2378_v7 = vpop.f32.mrf.mxu1 }
 0xf23   :  { %v1507_v8 = vpop.f32.mrf.mxu1 }
 0xf24   :  { %v2457_v10 = vpack.i.bf16 %v1507_v8, %v1278_v0  ;;  %v2482_v0 = vld [vmem:[%s3144_s13 + $0x28] sm:$0xff]  }
 0xf25   :  { %v2389_v11 = vpop.f32.mrf.mxu1 }
 0xf26   :  { %2458 = vrot.lane.b32.xlu1 %v2457_v10, %s3171_s25 }
 0xf27   :  { %v1510_v12 = vpop.f32.mrf.mxu1 }
 0xf29   :  { %v2390_v13 = vpop.f32.mrf.mxu1 }
 0xf98   :  { %v2459_v14 = vpop.permute.xlu1 %2458 }
 0xf99   :  { %v2461_v16 = vunpack.i.h.bf16 %v2459_v14  ;;  %v2460_v17 = vunpack.i.l.bf16 %v2459_v14 }
 0xf9b   :  { %v1517_v18 = vsel %vm194_vm2, %v1395_v5, %v2461_v16  ;;  %v1288_v19 = vsel %vm194_vm2, %v1166_v60, %v2460_v17 }
 0xf9c   :  { %v1523_v20 = vpack.c.bf16 %v1517_v18, %v1288_v19 }
 0xf9e   :  { %2396 = vmatmul.mubr.msk.bf16.vlgmr.msra.gmra.mxu0 %vm77_vm0, %v1523_v20 }
 0xf9f   :  { %2415 = vmatprep.mubr.msk.bf16.mxu0 %vm2587_vm1, %v2586_v15  ;;  %2408 = vmatpush3.bf16.msra.mxu0 %v2480_v62  ;;  %v2171_v62 = vld [vmem:[%s3146_s15 + $0x1] ss:$0 sm:$0xff] }
 0xfa0   :  { %2409 = vmatprep.subr.bf16.mxu0 %v2586_v15 }
 0xfa3   :  { %2410 = vmatpush3.bf16.msra.mxu0 %v2481_v63 }
 0xfa4   :  { %2411 = vmatprep.subr.bf16.mxu0 %v2586_v15 }
 0xfa7   :  { %2412 = vmatpush3.bf16.msra.mxu0 %v2482_v0 }
 0xfa8   :  { %2413 = vmatprep.subr.bf16.mxu0 %v2586_v15 }
 0xfab   :  { %2414 = vmatpush3.bf16.msra.mxu0 %v2483_v1 }
0x105e   :  { %v1581_v9 = vpop.f32.mrf.mxu0 }
0x105f   :  { %v1582_v22 = vadd.f32 %v2137_v21, %v1581_v9 }
0x1060   :  { %v2397_v25 = vpop.f32.mrf.mxu0 }
0x1061   :  { %v1588_v26 = vadd.f32 %v1582_v22, %v2923_v23 }
0x1062   :  { %v1584_v27 = vpop.f32.mrf.mxu0 }
0x1063   :  { %v1585_v28 = vadd.f32 %v2137_v21, %v1584_v27  ;;  %v1594_v29 = vsel %vm77_vm0, %v1588_v26, 0.0 }
0x1064   :  { %1595 = vadd.xlane.f32.xlu0 %v1594_v29  ;;  %v2398_v33 = vpop.f32.mrf.mxu0 }
0x1065   :  { %v1589_v34 = vadd.f32 %v1585_v28, %v2925_v24  ;;  %v2478_v24 = vld [vmem:[%s3142_s11 + $0x18] sm:$0xff]   ;;  %v2163_v33 = vld [vmem:[%s3145_s14 + $0x1] ss:$0 sm:$0xff] }
0x1066   :  { %2400 = vmatpush3.bf16.msra.mxu1 %v2478_v24 }
0x1067   :  { %v1597_v35 = vsel %vm77_vm0, %v1589_v34, 0.0  ;;  %2401 = vmatprep.subr.bf16.mxu1 %v2586_v15 }
0x1068   :  { %1598 = vadd.xlane.f32.xlu1 %v1597_v35 }
0x106a   :  { %2402 = vmatpush3.bf16.msra.mxu1 %v2479_v46 }
0x106b   :  { %2419 = vmatprep.subr.bf16.mxu1 %v2586_v15 }
0x10ed   :  { %v1596_v37 = vpop.xlane.xlu0 %1595 }
0x10ee   :  { %v1600_v39 = vmul.f32 0.03125, %v1596_v37 }
0x10f0   :  { %v1602_v40 = vsub.f32 %v1588_v26, %v1600_v39 }
0x10f1   :  { %v1599_v41 = vpop.xlane.xlu1 %1598 }
0x10f2   :  { %v1601_v30 = vmul.f32 0.03125, %v1599_v41  ;;  %v1604_v43 = vmul.f32 %v1602_v40, %v1602_v40 }
0x10f4   :  { %v1603_v44 = vsub.f32 %v1589_v34, %v1601_v30  ;;  %v1606_v23 = vsel %vm77_vm0, %v1604_v43, 0.0 }
0x10f5   :  { %1607 = vadd.xlane.f32.xlu0 %v1606_v23 }
0x10f6   :  { %v1605_v45 = vmul.f32 %v1603_v44, %v1603_v44 }
0x10f8   :  { %v1609_v36 = vsel %vm77_vm0, %v1605_v45, 0.0 }
0x10f9   :  { %1610 = vadd.xlane.f32.xlu0 %v1609_v36 }
0x117e   :  { %v1608_v47 = vpop.xlane.xlu0 %1607 }
0x117f   :  { %v1612_v48 = vmul.f32 0.03125, %v1608_v47 }
0x1181   :  { %v1614_v49 = vadd.f32 1e-12, %v1612_v48 }
0x1182   :  { %v1611_v50 = vpop.xlane.xlu0 %1610 }
0x1183   :  { %2538 = vrsqrt.f32 %v1614_v49  ;;  %v1613_v51 = vmul.f32 0.03125, %v1611_v50 }
0x1185   :  { %v1615_v52 = vadd.f32 1e-12, %v1613_v51 }
0x1187   :  { %2540 = vrsqrt.f32 %v1615_v52 }
0x1190   :  { %v2539_v54 = vpop.eup %2538 }
0x1191   :  { %v1618_v38 = vmul.f32 %v2539_v54, %v1602_v40  ;;  %v2484_v54 = vld [vmem:[%s3148_s17 + $0x8] sm:$0xff]  }
0x1193   :  { %v1626_v31 = vmul.f32 %v2143_v55, %v1618_v38  ;;  %v2485_v38 = vld [vmem:[%s3148_s17] sm:$0xff]  }
0x1194   :  { %v2541_v56 = vpop.eup %2540 }
0x1195   :  { %v1619_v58 = vmul.f32 %v2541_v56, %v1603_v44  ;;  %v1634_v32 = vadd.f32 %v2144_v59, %v1626_v31 }
0x1197   :  { %v1627_v42 = vmul.f32 %v2143_v55, %v1619_v58 }
0x1199   :  { %v1635_v60 = vadd.f32 %v2144_v59, %v1627_v42 }
0x119b   :  { %v1641_v61 = vpack.c.bf16 %v1635_v60, %v1634_v32 }
0x119d   :  { %2404 = vmatmul.mubr.msk.bf16.vlgmr.msra.gmra.mxu1 %vm77_vm0, %v1641_v61 }
0x119e   :  { %2423 = vmatprep.mubr.msk.bf16.mxu1 %vm2587_vm1, %v2586_v15  ;;  %2420 = vmatpush3.bf16.msra.mxu1 %v2484_v54 }
0x119f   :  { %2421 = vmatprep.subr.bf16.mxu1 %v2586_v15 }
0x11a2   :  { %2422 = vmatpush3.bf16.msra.mxu1 %v2485_v38 }
0x11a3   :  { %2427 = vmatprep.subr.bf16.mxu1 %v2586_v15 }
0x125d   :  { %v1699_v3 = vpop.f32.mrf.mxu1 }
0x125e   :  { %v1700_v4 = vadd.f32 %v2150_v2, %v1699_v3 }
0x125f   :  { %v2405_v5 = vpop.f32.mrf.mxu1 }
0x1260   :  { %v1708_v6 = vmul.f32 0.044715, %v1700_v4  ;;  %v1706_v22 = vmul.f32 0.5, %v1700_v4 }
0x1261   :  { %v1702_v57 = vpop.f32.mrf.mxu1 }
0x1262   :  { %v1710_v7 = vmul.f32 %v1708_v6, %v1700_v4  ;;  %v1703_v8 = vadd.f32 %v2150_v2, %v1702_v57  ;;  %v2172_v2 = vld [vmem:[%s3147_s16 + $0x1] ss:$0 sm:$0xff] }
0x1263   :  { %v2406_v10 = vpop.f32.mrf.mxu1 }
0x1264   :  { %v1712_v11 = vmul.f32 %v1710_v7, %v1700_v4  ;;  %v1709_v12 = vmul.f32 0.044715, %v1703_v8  ;;  %v1707_v25 = vmul.f32 0.5, %v1703_v8  ;;  %v2487_v10 = vld [vmem:[%s3150_s19 + $0x10] sm:$0xff]  }
0x1266   :  { %v1714_v13 = vadd.f32 %v1712_v11, %v1700_v4  ;;  %v1711_v14 = vmul.f32 %v1709_v12, %v1703_v8  ;;  %v2486_v4 = vld [vmem:[%s3150_s19 + $0x18] ss:$0 sps:$4 sm:$0x11]   ;;  %v2488_v11 = vld [vmem:[%s3150_s19 + $0x8] sm:$0xff]   ;;  %v2489_v12 = vld [vmem:[%s3150_s19] sm:$0xff]  }
0x1268   :  { %v1716_v16 = vmul.f32 0.7978846, %v1714_v13  ;;  %v1713_v17 = vmul.f32 %v1711_v14, %v1703_v8  ;;  %v2016_v13 = vld [vmem:[%s3172_s10] sm:$0x3]  ;;  %v2594_v14 = vmov 0  }
0x1269   :  { %2462 = vset.pattern.permute.xlu1 %v2594_v14  ;;  %2463 = vset.pattern.permute.xlu0 %v2594_v14 }
0x126a   :  { %2542 = vtanh.f32 %v1716_v16  ;;  %v1715_v18 = vadd.f32 %v1713_v17, %v1703_v8  ;;  %v1972_v8 = vsel %vm1861_vm6, %v2486_v4, 0  ;;  %v2173_v16 = vld [vmem:[%s3149_s18] ss:$0 sm:$0xff]  ;;  %s2595_s18 = smov [#allocation2]  }
0x126c   :  { %v1717_v19 = vmul.f32 0.7978846, %v1715_v18 }
0x126e   :  { %2544 = vtanh.f32 %v1717_v19 }
0x1277   :  { %v2543_v20 = vpop.eup %2542 }
0x1278   :  { %v1720_v21 = vadd.f32 1.0, %v2543_v20 }
0x127a   :  { %v1722_v27 = vmul.f32 %v1720_v21, %v1706_v22  ;;  %v2177_v22 = vld [vmem:[%s3151_s20] ss:$0 sm:$0xff]  ;;  %s2062_s20 = sshll.u32 %s2595_s18, 4  ;;  %s2063_s20 = int_to_ptr.vmem [resolvable:$true] %s2062_s20 }
0x127b   :  { %v2545_v9 = vpop.eup %2544  ;;  %s2554_s23 = scalar_lea.vmem %s2063_s20, 32  ;;  %p2559_p1 = scmp.lt.s32.totalorder %s2063_s20, %s2063_s20 }
0x127c   :  { %v1721_v26 = vadd.f32 1.0, %v2545_v9  ;;  %p2555_p0 = scmp.ne.s32.totalorder %s2063_s20, %s2554_s23  ;;  %p2560_p2 = scmp.lt.s32.totalorder %s2554_s23, %s2554_s23 }
0x127e   :  { %v1723_v28 = vmul.f32 %v1721_v26, %v1707_v25  ;;  %p2561_p3 = por %p2560_p2, %p2559_p1 }
0x1280   :  { %v1733_v29 = vpack.c.bf16 %v1723_v28, %v1722_v27  ;;  %p2562_p4 = pnand %p2561_p3, %p2555_p0 }
0x1282   :  { %2416 = vmatmul.mubr.msk.bf16.vlgmr.msra.gmra.mxu0 %vm899_vm5, %v1733_v29 }
0x1342   :  { %v1803_v34 = vpop.f32.mrf.mxu0 }
0x1343   :  { %v1804_v35 = vadd.f32 %v2163_v33, %v1803_v34 }
0x1344   :  { %v2417_v37 = vpop.f32.mrf.mxu0 }
0x1345   :  { %v1810_v39 = vadd.f32 %v1804_v35, %v1634_v32 }
0x1346   :  { %v1806_v40 = vpop.f32.mrf.mxu0 }
0x1347   :  { %v1807_v41 = vadd.f32 %v2163_v33, %v1806_v40  ;;  %v1816_v30 = vsel %vm77_vm0, %v1810_v39, 0.0 }
0x1348   :  { %1817 = vadd.xlane.f32.xlu1 %v1816_v30  ;;  %v2418_v43 = vpop.f32.mrf.mxu0 }
0x1349   :  { %v1811_v44 = vadd.f32 %v1807_v41, %v1635_v60 }
0x134b   :  { %v1819_v23 = vsel %vm77_vm0, %v1811_v44, 0.0 }
0x134c   :  { %1820 = vadd.xlane.f32.xlu0 %v1819_v23 }
0x13d1   :  { %v1818_v45 = vpop.xlane.xlu1 %1817 }
0x13d2   :  { %v1822_v36 = vmul.f32 0.03125, %v1818_v45 }
0x13d4   :  { %v1824_v24 = vsub.f32 %v1810_v39, %v1822_v36  ;;  %v2030_v39 = vand.u32 127, %v242_v53 }
0x13d5   :  { %v1821_v46 = vpop.xlane.xlu0 %1820 }
0x13d6   :  { %v1823_v47 = vmul.f32 0.03125, %v1821_v46  ;;  %v1826_v48 = vmul.f32 %v1824_v24, %v1824_v24 }
0x13d8   :  { %v1825_v49 = vsub.f32 %v1811_v44, %v1823_v47  ;;  %v1828_v50 = vsel %vm77_vm0, %v1826_v48, 0.0 }
0x13d9   :  { %1829 = vadd.xlane.f32.xlu1 %v1828_v50 }
0x13da   :  { %v1827_v51 = vmul.f32 %v1825_v49, %v1825_v49 }
0x13dc   :  { %v1831_v52 = vsel %vm77_vm0, %v1827_v51, 0.0 }
0x13dd   :  { %1832 = vadd.xlane.f32.xlu0 %v1831_v52 }
0x13ea   :  { %2032 = vperm.xlu1 %2462, %v2016_v13  }
0x1462   :  { %v1830_v55 = vpop.xlane.xlu1 %1829 }
0x1463   :  { %v1834_v56 = vmul.f32 0.03125, %v1830_v55 }
0x1465   :  { %v1836_v58 = vadd.f32 1e-12, %v1834_v56 }
0x1466   :  { %v1833_v31 = vpop.xlane.xlu0 %1832  ;;  %v2033_v40 = vpop.permute.xlu1 %2032 }
0x1467   :  { %2546 = vrsqrt.f32 %v1836_v58  ;;  %v1835_v59 = vmul.f32 0.03125, %v1833_v31  ;;  %vm2034_vm9 = vcmp.eq.s32.totalorder %v2030_v39, %v2033_v40 }
0x1469   :  { %v1837_v42 = vadd.f32 1e-12, %v1835_v59 }
0x146b   :  { %2548 = vrsqrt.f32 %v1837_v42 }
0x1474   :  { %v2547_v32 = vpop.eup %2546 }
0x1475   :  { %v1840_v60 = vmul.f32 %v2547_v32, %v1824_v24 }
0x1477   :  { %v1848_v0 = vmul.f32 %v2171_v62, %v1840_v60 }
0x1478   :  { %v2549_v61 = vpop.eup %2548 }
0x1479   :  { %v1841_v63 = vmul.f32 %v2549_v61, %v1825_v49  ;;  %v1856_v5 = vadd.f32 %v2172_v2, %v1848_v0 }
0x147b   :  { %v1849_v1 = vmul.f32 %v2171_v62, %v1841_v63 }
0x147d   :  { %v1857_v3 = vadd.f32 %v2172_v2, %v1849_v1 }
0x147f   :  { %v1859_v6 = vrot.slane %v1857_v3, 7 }
0x1481   :  { %v1862_v57 = vsel %vm1861_vm6, %v1856_v5, %v1859_v6 }
0x1482   :  { %v1867_v7 = vpack.c.bf16 %v1862_v57, %v1862_v57 }
0x1484   :  { %2424 = vmatmul.mubr.msk.bf16.vlgmr.msra.gmra.mxu1 %vm77_vm0, %v1867_v7 }
0x1485   :  { %2428 = vmatpush3.bf16.msra.mxu1 %v1972_v8  ;;  %2435 = vmatprep.mubr.msk.bf16.mxu1 %vm2587_vm1, %v2586_v15 }
0x1486   :  { %2429 = vmatprep.subr.bf16.mxu1 %v2586_v15 }
0x1489   :  { %2430 = vmatpush3.bf16.msra.mxu1 %v2487_v10 }
0x148a   :  { %2431 = vmatprep.subr.bf16.mxu1 %v2586_v15 }
0x148d   :  { %2432 = vmatpush3.bf16.msra.mxu1 %v2488_v11 }
0x148e   :  { %2433 = vmatprep.subr.bf16.mxu1 %v2586_v15 }
0x1491   :  { %2434 = vmatpush3.bf16.msra.mxu1 %v2489_v12 }
0x1544   :  { %v1924_v17 = vpop.f32.mrf.mxu1 }
0x1545   :  { %v1925_v18 = vadd.f32 %v2173_v16, %v1924_v17 }
0x1546   :  { %v2425_v15 = vpop.f32.mrf.mxu1 }
0x1547   :  { %v1930_v19 = vmax.f32 %v1925_v18, 0.0 }
0x1548   :  { %v1927_v20 = vpop.f32.mrf.mxu1 }
0x1549   :  { %v1938_v21 = vpack.c.bf16 %v1930_v19, %v1930_v19 }
0x154a   :  { %v2426_v9 = vpop.f32.mrf.mxu1 }
0x154b   :  { %2436 = vmatmul.mubr.msk.bf16.vlgmr.msra.gmra.mxu1 %vm1967_vm7, %v1938_v21 }
0x160b   :  { %v2008_v25 = vpop.f32.mrf.mxu1 }
0x160c   :  { %v2009_v26 = vadd.f32 %v2177_v22, %v2008_v25 }
0x160d   :  { %v2437_v27 = vpop.f32.mrf.mxu1 }
0x160e   :  { %v2017_v28 = vsel %vm2014_vm8, %v2009_v26, -inf  ;;  %2015 = vst.msk [vmem:[#allocation2] sm:$0x3] %vm2014_vm8, %v2009_v26  ;;  %v2035_v43 = vsel %vm2034_vm9, %v2009_v26, 0.0 }
0x160f   :  { %2018 = vmax.xlane.f32.xlu0 %v2017_v28  ;;  %v2011_v29 = vpop.f32.mrf.mxu1  ;;  %v2036_v44 = vsel %vm2014_vm8, %v2035_v43, 0.0 }
0x1611   :  { %v2438_v33 = vpop.f32.mrf.mxu1 }
0x1698   :  { %v2019_v34 = vpop.xlane.xlu0 %2018 }
0x1699   :  { %v2020_v35 = vsub.f32 %v2009_v26, %v2019_v34 }
0x169b   :  { %v2021_v37 = vmul.f32 1.442695, %v2020_v35 }
0x169d   :  { %2550 = vpow2.f32 %v2021_v37 }
0x16aa   :  { %v2551_v41 = vpop.eup %2550 }
0x16ab   :  { %v2023_v30 = vsel %vm2014_vm8, %v2551_v41, 0.0 }
0x16ac   :  { %2024 = vadd.xlane.f32.xlu0 %v2023_v30 }
0x16b0   :  { %2037 = vadd.xlane.f32.xlu0 %v2036_v44 }
0x1735   :  { %v2025_v23 = vpop.xlane.xlu0 %2024 }
0x1736   :  { %2552 = vlog2.f32 %v2025_v23 }
0x1739   :  { %v2038_v46 = vpop.xlane.xlu0 %2037 }
0x1743   :  { %v2553_v45 = vpop.eup %2552 }
0x1744   :  { %v2027_v36 = vmul.f32 0.6931472, %v2553_v45 }
0x1746   :  { %v2028_v24 = vadd.f32 %v2027_v36, %v2019_v34 }
0x1748   :  { %v2039_v47 = vsub.f32 %v2028_v24, %v2038_v46 }
0x174a   :  { %v2041_v48 = vsel %vm2040_vm10, %v2039_v47, 0.0 }
0x174b   :  { %2042 = vadd.xlane.f32.xlu0 %v2041_v48 }
0x174c   :  { %2565 = shalt.err (!%p2562_p4)
}
0x174d   :  { %2065 = dma.vmem_to_hbm [thread:$0]  %s2063_s20, 32, %s3152_s21, [#allocation3]  }
0x174e   :  { %s2596_s7 = smov [#allocation5]  }
0x17d4   :  { %v2043_v53 = vpop.xlane.xlu0 %2042 }
0x17d5   :  { %v2044_v49 = vrot.slane %v2043_v53, 4 }
0x17d7   :  { %v2045_v50 = vadd.f32 %v2044_v49, %v2043_v53 }
0x17d9   :  { %v2046_v51 = vrot.slane %v2045_v50, 2 }
0x17db   :  { %v2047_v52 = vadd.f32 %v2046_v51, %v2045_v50 }
0x17dd   :  { %v2048_v54 = vrot.slane %v2047_v52, 1 }
0x17df   :  { %v2049_v38 = vadd.f32 %v2048_v54, %v2047_v52 }
0x17e1   :  { %2439 = vpush %v2049_v38 }
0x1812   :  { %s2440_s13 = spop %2439 }
0x1813   :  { %s2053_s14 = smul.f32 0.5, %s2440_s13 }
0x1815   :  { %2055 = sst [smem:[#allocation5]] %s2053_s14 }
0x1816   :  { %2073 = dma.smem_to_hbm %s2596_s7, 16, %s3153_s22, [#allocation4]  }
0x1817   :  { %2582 = dma.done.wait [#allocation3], 32  }
0x1818   :  { %2583 = vsyncadd [#allocation3], 4294967264 }
0x1819   :  { %2584 = dma.done.wait [#allocation4], 16  }
0x181a   :  { %2585 = vsyncadd [#allocation4], 4294967280 }
0x181b   :  { %2080 = sfence }
0x181c   :  { %2081 = vsyncpa [#allocation3], 1 }
0x181d   :  { %2082 = vsyncpa [#allocation4], 1 }

</bundles_post_ra>
